<compile_context>
chip_gen: v7x
topology: tpu7x:2x2x1
jax: 0.10.0
libtpu: 0.0.40
codegen_flags: <defaults>
</compile_context>

<pallas_src>
import numpy as np
import jax
import jax.numpy as jnp
from jax.experimental import pallas as pl
from jax.experimental.pallas import tpu as pltpu

LAYER_NUMS = [1, 1]
DS_STRIDES = [1, 2]
DS_FILTERS = [8, 16]
US_STRIDES = [1, 2]
US_FILTERS = [8, 8]
NUM_INPUT = 4
EPS = 1e-3
UP_START = len(LAYER_NUMS) - len(US_STRIDES)


# ------------------------------ fused kernel --------------------------------

def _build_rpn_kernel(H, W):
    """Kernel for one batch element; activations live in (C, H*W) layout."""
    HW = H * W
    H2, W2 = H // 2, W // 2
    HW2 = H2 * W2
    U0, U1 = US_FILTERS
    C0, C1 = DS_FILTERS

    def conv3x3(x, ext_ref, w_ref, hh, ww, mask_l, mask_r, ones_row):
        """3x3 conv (zero-pad 1, stride 1) with folded BN scale + bias, done as
        ONE bf16 MXU matmul on an im2col matrix built from 9 shifted slices of
        a zero-padded flat scratch plus a constant-1 bias row."""
        n_ch = x.shape[0]
        hw = hh * ww
        base = ww + 1                                    # left zero-pad length
        ext_ref[pl.ds(0, n_ch), pl.ds(base, hw)] = x     # body fully overwritten
        pieces = []
        for ky in range(3):
            for kx in range(3):
                d = (ky - 1) * ww + (kx - 1)
                xs = ext_ref[pl.ds(0, n_ch), pl.ds(base + d, hw)]
                if kx == 0:                              # kill row wrap (left)
                    xs = jnp.where(mask_l, xs, 0.0)
                elif kx == 2:                            # kill row wrap (right)
                    xs = jnp.where(mask_r, xs, 0.0)
                pieces.append(xs)
        pieces.append(ones_row)                          # bias row
        im2col = jnp.concatenate(pieces, axis=0).astype(jnp.bfloat16)
        return jnp.dot(w_ref[...], im2col, preferred_element_type=jnp.float32)

    def kernel(x_ref, w00, w01, w10, w11, dw0, db0, dw1, db1, sdn, sup,
               o_ref, extb, exts):
        # ---- zero ONLY the pad columns of the padded scratches -------------
        # (body regions are fully overwritten by every conv call)
        zpb = jnp.zeros((C0, W + 1), jnp.float32)
        extb[:, 0:W + 1] = zpb
        extb[:, W + 1 + HW:] = zpb
        zps = jnp.zeros((C1, W2 + 1), jnp.float32)
        exts[:, 0:W2 + 1] = zps
        exts[:, W2 + 1 + HW2:] = zps

        # ---- hoisted boundary masks & bias rows (built once per step) ------
        colW = jax.lax.broadcasted_iota(jnp.int32, (1, HW), 1) % W
        mlW, mrW = colW >= 1, colW <= W - 2
        colW2 = jax.lax.broadcasted_iota(jnp.int32, (1, HW2), 1) % W2
        mlW2, mrW2 = colW2 >= 1, colW2 <= W2 - 2
        ones_b = jnp.ones((1, HW), jnp.float32)
        ones_s = jnp.ones((1, HW2), jnp.float32)

        x = x_ref[...].astype(jnp.float32)                            # (4, 256)

        # -------- block 0 (stride 1, HxW) --------
        h = jnp.maximum(conv3x3(x, extb, w00, H, W, mlW, mrW, ones_b), 0.0)
        h0 = jnp.maximum(conv3x3(h, extb, w01, H, W, mlW, mrW, ones_b), 0.0)

        # deblock 0: ConvTranspose2d(k=1,s=1) == 1x1 conv (scale folded) + bias
        up0 = jnp.maximum(
            jnp.dot(dw0[...], h0.astype(jnp.bfloat16),
                    preferred_element_type=jnp.float32) + db0[...], 0.0)
        o_ref[0:U0, :] = up0.astype(o_ref.dtype)

        # -------- block 1 (first conv stride 2 -> H/2 x W/2) --------
        # stride-2 conv == stride-1 conv sampled at even positions (k=3,pad=1);
        # the per-channel bias passes through the 0/1 subsample exactly.
        a = conv3x3(h0, extb, w10, H, W, mlW, mrW, ones_b)            # (16, 256)
        a = jnp.dot(a.astype(jnp.bfloat16), sdn[...],
                    preferred_element_type=jnp.float32)               # (16, 64)
        h = jnp.maximum(a, 0.0)
        h1 = jnp.maximum(conv3x3(h, exts, w11, H2, W2, mlW2, mrW2, ones_s), 0.0)

        # deblock 1: ConvTranspose2d(k=2,s=2) + folded BN + ReLU.  Phases of a
        # kernel==stride deconv are disjoint, so ReLU-then-scatter is exact.
        z = jnp.maximum(
            jnp.dot(dw1[...], h1.astype(jnp.bfloat16),
                    preferred_element_type=jnp.float32) + db1[...], 0.0)  # (32,64)
        zb16 = z.astype(jnp.bfloat16)
        up1 = jnp.dot(zb16[0:U1], sup[0], preferred_element_type=jnp.float32)
        for ph in range(1, 4):
            up1 = up1 + jnp.dot(zb16[ph * U1:(ph + 1) * U1], sup[ph],
                                preferred_element_type=jnp.float32)
        o_ref[U0:U0 + U1, :] = up1.astype(o_ref.dtype)

    return kernel


def rpn_forward(x_nchw, consts):
    """consts = pack_params(params) + [sdn, sup] (packed once, bf16)."""
    N, Cin, H, W = x_nchw.shape
    assert (Cin, H, W) == (NUM_INPUT, 16, 16)
    assert LAYER_NUMS == [1, 1] and DS_STRIDES == [1, 2] and US_STRIDES == [1, 2]
    HW = H * W
    H2, W2 = H // 2, W // 2
    HW2 = H2 * W2
    Ctot = sum(US_FILTERS)

    x = x_nchw.reshape(N, Cin, HW)                     # free reshape (NCHW flat)
    in_specs = [pl.BlockSpec((None, Cin, HW), lambda n: (n, 0, 0))]
    for a in consts:
        if a.ndim == 2:
            in_specs.append(pl.BlockSpec(a.shape, lambda n: (0, 0)))
        else:
            in_specs.append(pl.BlockSpec(a.shape, lambda n: (0, 0, 0)))

    out = pl.pallas_call(
        _build_rpn_kernel(H, W),
        out_shape=jax.ShapeDtypeStruct((N, Ctot, HW), x_nchw.dtype),
        grid=(N,),
        in_specs=in_specs,
        out_specs=pl.BlockSpec((None, Ctot, HW), lambda n: (n, 0, 0)),
        scratch_shapes=[
            pltpu.VMEM((DS_FILTERS[0], HW + 2 * W + 2), jnp.float32),    # 4/8-ch convs
            pltpu.VMEM((DS_FILTERS[1], HW2 + 2 * W2 + 2), jnp.float32),  # 16-ch conv
        ],
        compiler_params=pltpu.CompilerParams(dimension_semantics=("parallel",)),
    )(x, *consts)
    return out.reshape(N, Ctot, H, W)                  # free reshape -> NCHW


# ------------------- one-time packing of weights & aux ----------------------

def pack_params(params):
    """Fold BN (scale into weights, bias into an extra matmul column / add) and
    reorder weights into the bf16 matrices the kernel consumes (one-time)."""
    consts = []
    for block in params["blocks"]:
        for layer in block:
            w = layer["w"]                               # (3,3,Cin,Cout)  HWIO
            cin, cout = w.shape[2], w.shape[3]
            wm = jnp.transpose(w, (3, 0, 1, 2)).reshape(cout, 9 * cin)
            wm = wm * layer["scale"][:, None]            # fold BN scale
            wm = jnp.concatenate([wm, layer["bias"][:, None]], axis=1)
            consts.append(wm.astype(jnp.bfloat16))       # (Cout, 9*Cin+1)

    d0 = params["deblocks"][0]
    assert d0["stride"] == 1
    w0 = jnp.transpose(d0["w"][:, :, 0, 0]) * d0["scale"][:, None]   # (U0, C0)
    consts += [w0.astype(jnp.bfloat16),
               d0["bias"].reshape(-1, 1).astype(jnp.float32)]

    d1 = params["deblocks"][1]
    assert d1["stride"] == 2
    wt = d1["w"]                                         # (C1, U1, 2, 2)
    w1 = jnp.transpose(wt, (2, 3, 1, 0)).reshape(4 * wt.shape[1], wt.shape[0])
    w1 = w1 * jnp.tile(d1["scale"], 4)[:, None]
    consts += [w1.astype(jnp.bfloat16),
               jnp.tile(d1["bias"], 4).reshape(-1, 1).astype(jnp.float32)]
    return consts


def make_aux(H, W):
    """0/1 selection matrices (bf16-exact): stride-2 subsample and k=2
    pixel-shuffle scatter."""
    # TODO(synk): for large feature maps replace these dense O(HW^2/4) matrices
    # with strided slices / strided stores and a spatially tiled grid.
    H2, W2 = H // 2, W // 2
    HW, HW2 = H * W, H2 * W2
    sdn = np.zeros((HW, HW2), np.float32)
    for io in range(H2):
        for jo in range(W2):
            sdn[(2 * io) * W + 2 * jo, io * W2 + jo] = 1.0
    sup = np.zeros((4, HW2, HW), np.float32)
    for p in range(2):
        for q in range(2):
            for io in range(H2):
                for jo in range(W2):
                    sup[p * 2 + q, io * W2 + jo, (2 * io + p) * W + (2 * jo + q)] = 1.0
    return jnp.asarray(sdn, jnp.bfloat16), jnp.asarray(sup, jnp.bfloat16)


# -------------------------- params & pure-JAX ref ---------------------------

def _fold_bn(gamma, beta, mean, var):
    scale = gamma / jnp.sqrt(var + EPS)
    return scale, beta - mean * scale


def init_params(key):
    keys = iter(jax.random.split(key, 64))

    def bn(c):
        gamma = 1.0 + 0.1 * jax.random.normal(next(keys), (c,), jnp.float32)
        beta = 0.1 * jax.random.normal(next(keys), (c,), jnp.float32)
        mean = 0.1 * jax.random.normal(next(keys), (c,), jnp.float32)
        var = 1.0 + 0.1 * jax.random.uniform(next(keys), (c,), jnp.float32)
        return _fold_bn(gamma, beta, mean, var)

    in_filters = [NUM_INPUT] + DS_FILTERS[:-1]
    blocks, deblocks = [], []
    for i, ln in enumerate(LAYER_NUMS):
        layers = []
        cin, cout, stride = in_filters[i], DS_FILTERS[i], DS_STRIDES[i]
        for j in range(ln + 1):                    # first conv + `layer_num` convs
            ci = cin if j == 0 else cout
            s = stride if j == 0 else 1
            w = 0.1 * jax.random.normal(next(keys), (3, 3, ci, cout), jnp.float32)
            sc, b = bn(cout)
            layers.append(dict(w=w, scale=sc, bias=b, stride=s))
        blocks.append(layers)
        if i - UP_START >= 0:
            k = US_STRIDES[i - UP_START]
            uco = US_FILTERS[i - UP_START]
            wt = 0.1 * jax.random.normal(next(keys), (cout, uco, k, k), jnp.float32)
            sc, b = bn(uco)
            deblocks.append(dict(w=wt, scale=sc, bias=b, stride=k))
    return dict(blocks=blocks, deblocks=deblocks)


def ref_forward(x_nchw, params):
    x = jnp.transpose(x_nchw, (0, 2, 3, 1))
    ups = []
    for i, block in enumerate(params["blocks"]):
        for layer in block:
            y = jax.lax.conv_general_dilated(
                x, layer["w"], (layer["stride"], layer["stride"]),
                [(1, 1), (1, 1)], dimension_numbers=("NHWC", "HWIO", "NHWC"))
            x = jnp.maximum(y * layer["scale"] + layer["bias"], 0.0)
        di = i - UP_START
        if di >= 0:
            d = params["deblocks"][di]
            k = d["stride"]
            N, H, W, _ = x.shape
            Cout = d["w"].shape[1]
            z = jnp.einsum("nijc,copq->nijpqo", x, d["w"])
            z = jnp.transpose(z, (0, 1, 3, 2, 4, 5)).reshape(N, H * k, W * k, Cout)
            ups.append(jnp.maximum(z * d["scale"] + d["bias"], 0.0))
    out = jnp.concatenate(ups, axis=-1) if ups else x
    return jnp.transpose(out, (0, 3, 1, 2))


# ---------------------------------- main -------------------------------------

if __name__ == "__main__":
    root = jax.random.PRNGKey(0)
    kx, kp = jax.random.split(root)
    x = jax.random.normal(kx, (2, NUM_INPUT, 16, 16), jnp.float32)   # NCHW
    params = init_params(kp)

    sdn, sup = make_aux(16, 16)                 # one-time selection matrices
    consts = pack_params(params) + [sdn, sup]   # one-time weight repacking

    out = rpn_forward(x, consts)
    out = jax.block_until_ready(out)
    assert out.shape == (2, sum(US_FILTERS), 16, 16), out.shape

    ref = jax.block_until_ready(ref_forward(x, params))
    err = float(jnp.max(jnp.abs(out - ref)))
    # bf16 MXU operands across <=5 stacked matmul layers vs a pure-f32
    # reference: allow bf16-level tolerance (typical max-abs error ~1e-2).
    assert err < 1e-1, f"max abs err {err}"
    print("KERNEL_OK")
</pallas_src>

<mosaic_0001>
module attributes {stable_mosaic.version = 11 : i64} {
  func.func @kernel(%arg0: i32, %arg1: memref<1x4x256xf32, #tpu.memory_space<vmem>>, %arg2: memref<8x37xbf16, #tpu.memory_space<vmem>>, %arg3: memref<8x73xbf16, #tpu.memory_space<vmem>>, %arg4: memref<16x73xbf16, #tpu.memory_space<vmem>>, %arg5: memref<16x145xbf16, #tpu.memory_space<vmem>>, %arg6: memref<8x8xbf16, #tpu.memory_space<vmem>>, %arg7: memref<8x1xf32, #tpu.memory_space<vmem>>, %arg8: memref<32x16xbf16, #tpu.memory_space<vmem>>, %arg9: memref<32x1xf32, #tpu.memory_space<vmem>>, %arg10: memref<256x64xbf16, #tpu.memory_space<vmem>>, %arg11: memref<4x64x256xbf16, #tpu.memory_space<vmem>>, %arg12: memref<1x16x256xf32, #tpu.memory_space<vmem>>, %arg13: memref<8x290xf32, #tpu.memory_space<vmem>>, %arg14: memref<16x82xf32, #tpu.memory_space<vmem>>) attributes {dimension_semantics = [#tpu.dimension_semantics<parallel>], iteration_bounds = array<i64: 2>, scalar_prefetch = 0 : i64, scratch_operands = 2 : i64, tpu.core_type = #tpu.core_type<tc>, window_params = [{transform_indices = @transform_0, window_bounds = array<i64: 1, 4, 256>}, {pipeline_mode = #tpu.pipeline_mode<synchronous>, transform_indices = @transform_1, window_bounds = array<i64: 8, 37>}, {pipeline_mode = #tpu.pipeline_mode<synchronous>, transform_indices = @transform_2, window_bounds = array<i64: 8, 73>}, {pipeline_mode = #tpu.pipeline_mode<synchronous>, transform_indices = @transform_3, window_bounds = array<i64: 16, 73>}, {pipeline_mode = #tpu.pipeline_mode<synchronous>, transform_indices = @transform_4, window_bounds = array<i64: 16, 145>}, {pipeline_mode = #tpu.pipeline_mode<synchronous>, transform_indices = @transform_5, window_bounds = array<i64: 8, 8>}, {pipeline_mode = #tpu.pipeline_mode<synchronous>, transform_indices = @transform_6, window_bounds = array<i64: 8, 1>}, {pipeline_mode = #tpu.pipeline_mode<synchronous>, transform_indices = @transform_7, window_bounds = array<i64: 32, 16>}, {pipeline_mode = #tpu.pipeline_mode<synchronous>, transform_indices = @transform_8, window_bounds = array<i64: 32, 1>}, {pipeline_mode = #tpu.pipeline_mode<synchronous>, transform_indices = @transform_9, window_bounds = array<i64: 256, 64>}, {pipeline_mode = #tpu.pipeline_mode<synchronous>, transform_indices = @transform_10, window_bounds = array<i64: 4, 64, 256>}, {transform_indices = @transform_11, window_bounds = array<i64: 1, 16, 256>}]} {
    %cst = arith.constant 0.000000e+00 : f32
    %0 = vector.broadcast %cst : f32 to vector<8x17xf32>
    %c0 = arith.constant 0 : index
    %c0_0 = arith.constant 0 : index
    %1 = vector.load %arg13[%c0, %c0_0] : memref<8x290xf32, #tpu.memory_space<vmem>>, vector<8x17xf32>
    tpu.vector_store %arg13[%c0, %c0_0], %0 {strides = array<i32>} : memref<8x290xf32, #tpu.memory_space<vmem>>, vector<8x17xf32>,
    %c0_1 = arith.constant 0 : index
    %c273 = arith.constant 273 : index
    %2 = vector.load %arg13[%c0_1, %c273] : memref<8x290xf32, #tpu.memory_space<vmem>>, vector<8x17xf32>
    tpu.vector_store %arg13[%c0_1, %c273], %0 {strides = array<i32>} : memref<8x290xf32, #tpu.memory_space<vmem>>, vector<8x17xf32>,
    %cst_2 = arith.constant 0.000000e+00 : f32
    %3 = vector.broadcast %cst_2 : f32 to vector<16x9xf32>
    %c0_3 = arith.constant 0 : index
    %c0_4 = arith.constant 0 : index
    %4 = vector.load %arg14[%c0_3, %c0_4] : memref<16x82xf32, #tpu.memory_space<vmem>>, vector<16x9xf32>
    tpu.vector_store %arg14[%c0_3, %c0_4], %3 {strides = array<i32>} : memref<16x82xf32, #tpu.memory_space<vmem>>, vector<16x9xf32>,
    %c0_5 = arith.constant 0 : index
    %c73 = arith.constant 73 : index
    %5 = vector.load %arg14[%c0_5, %c73] : memref<16x82xf32, #tpu.memory_space<vmem>>, vector<16x9xf32>
    tpu.vector_store %arg14[%c0_5, %c73], %3 {strides = array<i32>} : memref<16x82xf32, #tpu.memory_space<vmem>>, vector<16x9xf32>,
    %6 = tpu.iota {dimensions = array<i32: 1>} : vector<1x256xi32>
    %c16_i32 = arith.constant 16 : i32
    %c0_i32 = arith.constant 0 : i32
    %7 = arith.cmpi eq, %c16_i32, %c0_i32 : i32
    %c1_i32 = arith.constant 1 : i32
    %8 = arith.select %7, %c1_i32, %c16_i32 : i32
    %9 = vector.broadcast %8 : i32 to vector<1x256xi32>
    %10 = arith.remsi %6, %9 : vector<1x256xi32>
    %c0_i32_6 = arith.constant 0 : i32
    %11 = vector.broadcast %c0_i32_6 : i32 to vector<1x256xi32>
    %12 = arith.cmpi ne, %10, %11 : vector<1x256xi32>
    %c0_i32_7 = arith.constant 0 : i32
    %13 = vector.broadcast %c0_i32_7 : i32 to vector<1x256xi32>
    %14 = arith.cmpi slt, %10, %13 : vector<1x256xi32>
    %c0_i32_8 = arith.constant 0 : i32
    %15 = arith.cmpi slt, %8, %c0_i32_8 : i32
    %16 = vector.broadcast %15 : i1 to vector<1x256xi1>
    %17 = vector.broadcast %16 : vector<1x256xi1> to vector<1x256xi1>
    %18 = arith.xori %14, %17 : vector<1x256xi1>
    %19 = arith.andi %18, %12 : vector<1x256xi1>
    %20 = vector.broadcast %8 : i32 to vector<1x256xi32>
    %21 = arith.addi %10, %20 : vector<1x256xi32>
    %22 = arith.select %19, %21, %10 : vector<1x256xi1>, vector<1x256xi32>
    %c1_i32_9 = arith.constant 1 : i32
    %23 = vector.broadcast %c1_i32_9 : i32 to vector<1x256xi32>
    %24 = arith.cmpi sge, %22, %23 : vector<1x256xi32>
    %c14_i32 = arith.constant 14 : i32
    %25 = vector.broadcast %c14_i32 : i32 to vector<1x256xi32>
    %26 = arith.cmpi sle, %22, %25 : vector<1x256xi32>
    %27 = tpu.iota {dimensions = array<i32: 1>} : vector<1x64xi32>
    %c8_i32 = arith.constant 8 : i32
    %c0_i32_10 = arith.constant 0 : i32
    %28 = arith.cmpi eq, %c8_i32, %c0_i32_10 : i32
    %c1_i32_11 = arith.constant 1 : i32
    %29 = arith.select %28, %c1_i32_11, %c8_i32 : i32
    %30 = vector.broadcast %29 : i32 to vector<1x64xi32>
    %31 = arith.remsi %27, %30 : vector<1x64xi32>
    %c0_i32_12 = arith.constant 0 : i32
    %32 = vector.broadcast %c0_i32_12 : i32 to vector<1x64xi32>
    %33 = arith.cmpi ne, %31, %32 : vector<1x64xi32>
    %c0_i32_13 = arith.constant 0 : i32
    %34 = vector.broadcast %c0_i32_13 : i32 to vector<1x64xi32>
    %35 = arith.cmpi slt, %31, %34 : vector<1x64xi32>
    %c0_i32_14 = arith.constant 0 : i32
    %36 = arith.cmpi slt, %29, %c0_i32_14 : i32
    %37 = vector.broadcast %36 : i1 to vector<1x64xi1>
    %38 = vector.broadcast %37 : vector<1x64xi1> to vector<1x64xi1>
    %39 = arith.xori %35, %38 : vector<1x64xi1>
    %40 = arith.andi %39, %33 : vector<1x64xi1>
    %41 = vector.broadcast %29 : i32 to vector<1x64xi32>
    %42 = arith.addi %31, %41 : vector<1x64xi32>
    %43 = arith.select %40, %42, %31 : vector<1x64xi1>, vector<1x64xi32>
    %c1_i32_15 = arith.constant 1 : i32
    %44 = vector.broadcast %c1_i32_15 : i32 to vector<1x64xi32>
    %45 = arith.cmpi sge, %43, %44 : vector<1x64xi32>
    %c6_i32 = arith.constant 6 : i32
    %46 = vector.broadcast %c6_i32 : i32 to vector<1x64xi32>
    %47 = arith.cmpi sle, %43, %46 : vector<1x64xi32>
    %cst_16 = arith.constant 1.000000e+00 : f32
    %48 = vector.broadcast %cst_16 : f32 to vector<1x256xf32>
    %cst_17 = arith.constant 1.000000e+00 : f32
    %49 = vector.broadcast %cst_17 : f32 to vector<1x64xf32>
    %c0_18 = arith.constant 0 : index
    %c0_19 = arith.constant 0 : index
    %c0_20 = arith.constant 0 : index
    %50 = vector.load %arg1[%c0_18, %c0_19, %c0_20] : memref<1x4x256xf32, #tpu.memory_space<vmem>>, vector<1x4x256xf32>
    %51 = vector.shape_cast %50 : vector<1x4x256xf32> to vector<4x256xf32>
    %c0_21 = arith.constant 0 : index
    %c17 = arith.constant 17 : index
    %52 = vector.load %arg13[%c0_21, %c17] : memref<8x290xf32, #tpu.memory_space<vmem>>, vector<4x256xf32>
    tpu.vector_store %arg13[%c0_21, %c17], %51 {strides = array<i32>} : memref<8x290xf32, #tpu.memory_space<vmem>>, vector<4x256xf32>,
    %c0_22 = arith.constant 0 : index
    %c0_23 = arith.constant 0 : index
    %53 = vector.load %arg13[%c0_22, %c0_23] : memref<8x290xf32, #tpu.memory_space<vmem>>, vector<4x256xf32>
    %cst_24 = arith.constant 0.000000e+00 : f32
    %54 = vector.shape_cast %24 : vector<1x256xi1> to vector<1x256xi1>
    %55 = vector.broadcast %54 : vector<1x256xi1> to vector<4x256xi1>
    %56 = vector.broadcast %cst_24 : f32 to vector<4x256xf32>
    %57 = arith.select %55, %53, %56 : vector<4x256xi1>, vector<4x256xf32>
    %c0_25 = arith.constant 0 : index
    %c1 = arith.constant 1 : index
    %58 = vector.load %arg13[%c0_25, %c1] : memref<8x290xf32, #tpu.memory_space<vmem>>, vector<4x256xf32>
    %c0_26 = arith.constant 0 : index
    %c2 = arith.constant 2 : index
    %59 = vector.load %arg13[%c0_26, %c2] : memref<8x290xf32, #tpu.memory_space<vmem>>, vector<4x256xf32>
    %cst_27 = arith.constant 0.000000e+00 : f32
    %60 = vector.shape_cast %26 : vector<1x256xi1> to vector<1x256xi1>
    %61 = vector.broadcast %60 : vector<1x256xi1> to vector<4x256xi1>
    %62 = vector.broadcast %cst_27 : f32 to vector<4x256xf32>
    %63 = arith.select %61, %59, %62 : vector<4x256xi1>, vector<4x256xf32>
    %c0_28 = arith.constant 0 : index
    %c16 = arith.constant 16 : index
    %64 = vector.load %arg13[%c0_28, %c16] : memref<8x290xf32, #tpu.memory_space<vmem>>, vector<4x256xf32>
    %cst_29 = arith.constant 0.000000e+00 : f32
    %65 = vector.shape_cast %24 : vector<1x256xi1> to vector<1x256xi1>
    %66 = vector.broadcast %65 : vector<1x256xi1> to vector<4x256xi1>
    %67 = vector.broadcast %cst_29 : f32 to vector<4x256xf32>
    %68 = arith.select %66, %64, %67 : vector<4x256xi1>, vector<4x256xf32>
    %c0_30 = arith.constant 0 : index
    %c17_31 = arith.constant 17 : index
    %69 = vector.load %arg13[%c0_30, %c17_31] : memref<8x290xf32, #tpu.memory_space<vmem>>, vector<4x256xf32>
    %c0_32 = arith.constant 0 : index
    %c18 = arith.constant 18 : index
    %70 = vector.load %arg13[%c0_32, %c18] : memref<8x290xf32, #tpu.memory_space<vmem>>, vector<4x256xf32>
    %cst_33 = arith.constant 0.000000e+00 : f32
    %71 = vector.shape_cast %26 : vector<1x256xi1> to vector<1x256xi1>
    %72 = vector.broadcast %71 : vector<1x256xi1> to vector<4x256xi1>
    %73 = vector.broadcast %cst_33 : f32 to vector<4x256xf32>
    %74 = arith.select %72, %70, %73 : vector<4x256xi1>, vector<4x256xf32>
    %c0_34 = arith.constant 0 : index
    %c32 = arith.constant 32 : index
    %75 = vector.load %arg13[%c0_34, %c32] : memref<8x290xf32, #tpu.memory_space<vmem>>, vector<4x256xf32>
    %cst_35 = arith.constant 0.000000e+00 : f32
    %76 = vector.shape_cast %24 : vector<1x256xi1> to vector<1x256xi1>
    %77 = vector.broadcast %76 : vector<1x256xi1> to vector<4x256xi1>
    %78 = vector.broadcast %cst_35 : f32 to vector<4x256xf32>
    %79 = arith.select %77, %75, %78 : vector<4x256xi1>, vector<4x256xf32>
    %c0_36 = arith.constant 0 : index
    %c33 = arith.constant 33 : index
    %80 = vector.load %arg13[%c0_36, %c33] : memref<8x290xf32, #tpu.memory_space<vmem>>, vector<4x256xf32>
    %c0_37 = arith.constant 0 : index
    %c34 = arith.constant 34 : index
    %81 = vector.load %arg13[%c0_37, %c34] : memref<8x290xf32, #tpu.memory_space<vmem>>, vector<4x256xf32>
    %cst_38 = arith.constant 0.000000e+00 : f32
    %82 = vector.shape_cast %26 : vector<1x256xi1> to vector<1x256xi1>
    %83 = vector.broadcast %82 : vector<1x256xi1> to vector<4x256xi1>
    %84 = vector.broadcast %cst_38 : f32 to vector<4x256xf32>
    %85 = arith.select %83, %81, %84 : vector<4x256xi1>, vector<4x256xf32>
    %86 = tpu.concatenate %57, %58, %63, %68, %69, %74, %79, %80, %85, %48 in 0 : vector<4x256xf32>, vector<4x256xf32>, vector<4x256xf32>, vector<4x256xf32>, vector<4x256xf32>, vector<4x256xf32>, vector<4x256xf32>, vector<4x256xf32>, vector<4x256xf32>, vector<1x256xf32> -> vector<37x256xf32>
    %87 = arith.truncf %86 : vector<37x256xf32> to vector<37x256xbf16>
    %c0_39 = arith.constant 0 : index
    %c0_40 = arith.constant 0 : index
    %88 = vector.load %arg2[%c0_39, %c0_40] : memref<8x37xbf16, #tpu.memory_space<vmem>>, vector<8x37xbf16>
    %cst_41 = arith.constant dense<0.000000e+00> : vector<8x256xf32>
    %89 = tpu.matmul %88, %87, %cst_41 {dimension_numbers = #tpu.dot_dimension_numbers<[1], [0], [0], [1], [0, 0, 1, 1], [], []>} : vector<8x37xbf16>, vector<37x256xbf16>, vector<8x256xf32> -> vector<8x256xf32>
    %cst_42 = arith.constant 0.000000e+00 : f32
    %90 = vector.broadcast %cst_42 : f32 to vector<8x256xf32>
    %91 = arith.maximumf %89, %90 : vector<8x256xf32>
    %c0_43 = arith.constant 0 : index
    %c17_44 = arith.constant 17 : index
    %92 = vector.load %arg13[%c0_43, %c17_44] : memref<8x290xf32, #tpu.memory_space<vmem>>, vector<8x256xf32>
    tpu.vector_store %arg13[%c0_43, %c17_44], %91 {strides = array<i32>} : memref<8x290xf32, #tpu.memory_space<vmem>>, vector<8x256xf32>,
    %c0_45 = arith.constant 0 : index
    %c0_46 = arith.constant 0 : index
    %93 = vector.load %arg13[%c0_45, %c0_46] : memref<8x290xf32, #tpu.memory_space<vmem>>, vector<8x256xf32>
    %cst_47 = arith.constant 0.000000e+00 : f32
    %94 = vector.shape_cast %24 : vector<1x256xi1> to vector<1x256xi1>
    %95 = vector.broadcast %94 : vector<1x256xi1> to vector<8x256xi1>
    %96 = vector.broadcast %cst_47 : f32 to vector<8x256xf32>
    %97 = arith.select %95, %93, %96 : vector<8x256xi1>, vector<8x256xf32>
    %c0_48 = arith.constant 0 : index
    %c1_49 = arith.constant 1 : index
    %98 = vector.load %arg13[%c0_48, %c1_49] : memref<8x290xf32, #tpu.memory_space<vmem>>, vector<8x256xf32>
    %c0_50 = arith.constant 0 : index
    %c2_51 = arith.constant 2 : index
    %99 = vector.load %arg13[%c0_50, %c2_51] : memref<8x290xf32, #tpu.memory_space<vmem>>, vector<8x256xf32>
    %cst_52 = arith.constant 0.000000e+00 : f32
    %100 = vector.shape_cast %26 : vector<1x256xi1> to vector<1x256xi1>
    %101 = vector.broadcast %100 : vector<1x256xi1> to vector<8x256xi1>
    %102 = vector.broadcast %cst_52 : f32 to vector<8x256xf32>
    %103 = arith.select %101, %99, %102 : vector<8x256xi1>, vector<8x256xf32>
    %c0_53 = arith.constant 0 : index
    %c16_54 = arith.constant 16 : index
    %104 = vector.load %arg13[%c0_53, %c16_54] : memref<8x290xf32, #tpu.memory_space<vmem>>, vector<8x256xf32>
    %cst_55 = arith.constant 0.000000e+00 : f32
    %105 = vector.shape_cast %24 : vector<1x256xi1> to vector<1x256xi1>
    %106 = vector.broadcast %105 : vector<1x256xi1> to vector<8x256xi1>
    %107 = vector.broadcast %cst_55 : f32 to vector<8x256xf32>
    %108 = arith.select %106, %104, %107 : vector<8x256xi1>, vector<8x256xf32>
    %c0_56 = arith.constant 0 : index
    %c17_57 = arith.constant 17 : index
    %109 = vector.load %arg13[%c0_56, %c17_57] : memref<8x290xf32, #tpu.memory_space<vmem>>, vector<8x256xf32>
    %c0_58 = arith.constant 0 : index
    %c18_59 = arith.constant 18 : index
    %110 = vector.load %arg13[%c0_58, %c18_59] : memref<8x290xf32, #tpu.memory_space<vmem>>, vector<8x256xf32>
    %cst_60 = arith.constant 0.000000e+00 : f32
    %111 = vector.shape_cast %26 : vector<1x256xi1> to vector<1x256xi1>
    %112 = vector.broadcast %111 : vector<1x256xi1> to vector<8x256xi1>
    %113 = vector.broadcast %cst_60 : f32 to vector<8x256xf32>
    %114 = arith.select %112, %110, %113 : vector<8x256xi1>, vector<8x256xf32>
    %c0_61 = arith.constant 0 : index
    %c32_62 = arith.constant 32 : index
    %115 = vector.load %arg13[%c0_61, %c32_62] : memref<8x290xf32, #tpu.memory_space<vmem>>, vector<8x256xf32>
    %cst_63 = arith.constant 0.000000e+00 : f32
    %116 = vector.shape_cast %24 : vector<1x256xi1> to vector<1x256xi1>
    %117 = vector.broadcast %116 : vector<1x256xi1> to vector<8x256xi1>
    %118 = vector.broadcast %cst_63 : f32 to vector<8x256xf32>
    %119 = arith.select %117, %115, %118 : vector<8x256xi1>, vector<8x256xf32>
    %c0_64 = arith.constant 0 : index
    %c33_65 = arith.constant 33 : index
    %120 = vector.load %arg13[%c0_64, %c33_65] : memref<8x290xf32, #tpu.memory_space<vmem>>, vector<8x256xf32>
    %c0_66 = arith.constant 0 : index
    %c34_67 = arith.constant 34 : index
    %121 = vector.load %arg13[%c0_66, %c34_67] : memref<8x290xf32, #tpu.memory_space<vmem>>, vector<8x256xf32>
    %cst_68 = arith.constant 0.000000e+00 : f32
    %122 = vector.shape_cast %26 : vector<1x256xi1> to vector<1x256xi1>
    %123 = vector.broadcast %122 : vector<1x256xi1> to vector<8x256xi1>
    %124 = vector.broadcast %cst_68 : f32 to vector<8x256xf32>
    %125 = arith.select %123, %121, %124 : vector<8x256xi1>, vector<8x256xf32>
    %126 = tpu.concatenate %97, %98, %103, %108, %109, %114, %119, %120, %125, %48 in 0 : vector<8x256xf32>, vector<8x256xf32>, vector<8x256xf32>, vector<8x256xf32>, vector<8x256xf32>, vector<8x256xf32>, vector<8x256xf32>, vector<8x256xf32>, vector<8x256xf32>, vector<1x256xf32> -> vector<73x256xf32>
    %127 = arith.truncf %126 : vector<73x256xf32> to vector<73x256xbf16>
    %c0_69 = arith.constant 0 : index
    %c0_70 = arith.constant 0 : index
    %128 = vector.load %arg3[%c0_69, %c0_70] : memref<8x73xbf16, #tpu.memory_space<vmem>>, vector<8x73xbf16>
    %cst_71 = arith.constant dense<0.000000e+00> : vector<8x256xf32>
    %129 = tpu.matmul %128, %127, %cst_71 {dimension_numbers = #tpu.dot_dimension_numbers<[1], [0], [0], [1], [0, 0, 1, 1], [], []>} : vector<8x73xbf16>, vector<73x256xbf16>, vector<8x256xf32> -> vector<8x256xf32>
    %cst_72 = arith.constant 0.000000e+00 : f32
    %130 = vector.broadcast %cst_72 : f32 to vector<8x256xf32>
    %131 = arith.maximumf %129, %130 : vector<8x256xf32>
    %c0_73 = arith.constant 0 : index
    %c0_74 = arith.constant 0 : index
    %132 = vector.load %arg6[%c0_73, %c0_74] : memref<8x8xbf16, #tpu.memory_space<vmem>>, vector<8x8xbf16>
    %133 = arith.truncf %131 : vector<8x256xf32> to vector<8x256xbf16>
    %cst_75 = arith.constant dense<0.000000e+00> : vector<8x256xf32>
    %134 = tpu.matmul %132, %133, %cst_75 {dimension_numbers = #tpu.dot_dimension_numbers<[1], [0], [0], [1], [0, 0, 1, 1], [], []>} : vector<8x8xbf16>, vector<8x256xbf16>, vector<8x256xf32> -> vector<8x256xf32>
    %c0_76 = arith.constant 0 : index
    %c0_77 = arith.constant 0 : index
    %135 = vector.load %arg7[%c0_76, %c0_77] : memref<8x1xf32, #tpu.memory_space<vmem>>, vector<8x1xf32>
    %136 = vector.broadcast %135 : vector<8x1xf32> to vector<8x256xf32>
    %137 = arith.addf %134, %136 : vector<8x256xf32>
    %cst_78 = arith.constant 0.000000e+00 : f32
    %138 = vector.broadcast %cst_78 : f32 to vector<8x256xf32>
    %139 = arith.maximumf %137, %138 : vector<8x256xf32>
    %c0_79 = arith.constant 0 : index
    %c0_80 = arith.constant 0 : index
    %c0_81 = arith.constant 0 : index
    %140 = vector.load %arg12[%c0_79, %c0_80, %c0_81] : memref<1x16x256xf32, #tpu.memory_space<vmem>>, vector<1x8x256xf32>
    %141 = vector.shape_cast %140 : vector<1x8x256xf32> to vector<8x256xf32>
    %142 = vector.shape_cast %139 : vector<8x256xf32> to vector<1x8x256xf32>
    tpu.vector_store %arg12[%c0_79, %c0_80, %c0_81], %142 {strides = array<i32>} : memref<1x16x256xf32, #tpu.memory_space<vmem>>, vector<1x8x256xf32>,
    %c0_82 = arith.constant 0 : index
    %c17_83 = arith.constant 17 : index
    %143 = vector.load %arg13[%c0_82, %c17_83] : memref<8x290xf32, #tpu.memory_space<vmem>>, vector<8x256xf32>
    tpu.vector_store %arg13[%c0_82, %c17_83], %131 {strides = array<i32>} : memref<8x290xf32, #tpu.memory_space<vmem>>, vector<8x256xf32>,
    %c0_84 = arith.constant 0 : index
    %c0_85 = arith.constant 0 : index
    %144 = vector.load %arg13[%c0_84, %c0_85] : memref<8x290xf32, #tpu.memory_space<vmem>>, vector<8x256xf32>
    %cst_86 = arith.constant 0.000000e+00 : f32
    %145 = vector.shape_cast %24 : vector<1x256xi1> to vector<1x256xi1>
    %146 = vector.broadcast %145 : vector<1x256xi1> to vector<8x256xi1>
    %147 = vector.broadcast %cst_86 : f32 to vector<8x256xf32>
    %148 = arith.select %146, %144, %147 : vector<8x256xi1>, vector<8x256xf32>
    %c0_87 = arith.constant 0 : index
    %c1_88 = arith.constant 1 : index
    %149 = vector.load %arg13[%c0_87, %c1_88] : memref<8x290xf32, #tpu.memory_space<vmem>>, vector<8x256xf32>
    %c0_89 = arith.constant 0 : index
    %c2_90 = arith.constant 2 : index
    %150 = vector.load %arg13[%c0_89, %c2_90] : memref<8x290xf32, #tpu.memory_space<vmem>>, vector<8x256xf32>
    %cst_91 = arith.constant 0.000000e+00 : f32
    %151 = vector.shape_cast %26 : vector<1x256xi1> to vector<1x256xi1>
    %152 = vector.broadcast %151 : vector<1x256xi1> to vector<8x256xi1>
    %153 = vector.broadcast %cst_91 : f32 to vector<8x256xf32>
    %154 = arith.select %152, %150, %153 : vector<8x256xi1>, vector<8x256xf32>
    %c0_92 = arith.constant 0 : index
    %c16_93 = arith.constant 16 : index
    %155 = vector.load %arg13[%c0_92, %c16_93] : memref<8x290xf32, #tpu.memory_space<vmem>>, vector<8x256xf32>
    %cst_94 = arith.constant 0.000000e+00 : f32
    %156 = vector.shape_cast %24 : vector<1x256xi1> to vector<1x256xi1>
    %157 = vector.broadcast %156 : vector<1x256xi1> to vector<8x256xi1>
    %158 = vector.broadcast %cst_94 : f32 to vector<8x256xf32>
    %159 = arith.select %157, %155, %158 : vector<8x256xi1>, vector<8x256xf32>
    %c0_95 = arith.constant 0 : index
    %c17_96 = arith.constant 17 : index
    %160 = vector.load %arg13[%c0_95, %c17_96] : memref<8x290xf32, #tpu.memory_space<vmem>>, vector<8x256xf32>
    %c0_97 = arith.constant 0 : index
    %c18_98 = arith.constant 18 : index
    %161 = vector.load %arg13[%c0_97, %c18_98] : memref<8x290xf32, #tpu.memory_space<vmem>>, vector<8x256xf32>
    %cst_99 = arith.constant 0.000000e+00 : f32
    %162 = vector.shape_cast %26 : vector<1x256xi1> to vector<1x256xi1>
    %163 = vector.broadcast %162 : vector<1x256xi1> to vector<8x256xi1>
    %164 = vector.broadcast %cst_99 : f32 to vector<8x256xf32>
    %165 = arith.select %163, %161, %164 : vector<8x256xi1>, vector<8x256xf32>
    %c0_100 = arith.constant 0 : index
    %c32_101 = arith.constant 32 : index
    %166 = vector.load %arg13[%c0_100, %c32_101] : memref<8x290xf32, #tpu.memory_space<vmem>>, vector<8x256xf32>
    %cst_102 = arith.constant 0.000000e+00 : f32
    %167 = vector.shape_cast %24 : vector<1x256xi1> to vector<1x256xi1>
    %168 = vector.broadcast %167 : vector<1x256xi1> to vector<8x256xi1>
    %169 = vector.broadcast %cst_102 : f32 to vector<8x256xf32>
    %170 = arith.select %168, %166, %169 : vector<8x256xi1>, vector<8x256xf32>
    %c0_103 = arith.constant 0 : index
    %c33_104 = arith.constant 33 : index
    %171 = vector.load %arg13[%c0_103, %c33_104] : memref<8x290xf32, #tpu.memory_space<vmem>>, vector<8x256xf32>
    %c0_105 = arith.constant 0 : index
    %c34_106 = arith.constant 34 : index
    %172 = vector.load %arg13[%c0_105, %c34_106] : memref<8x290xf32, #tpu.memory_space<vmem>>, vector<8x256xf32>
    %cst_107 = arith.constant 0.000000e+00 : f32
    %173 = vector.shape_cast %26 : vector<1x256xi1> to vector<1x256xi1>
    %174 = vector.broadcast %173 : vector<1x256xi1> to vector<8x256xi1>
    %175 = vector.broadcast %cst_107 : f32 to vector<8x256xf32>
    %176 = arith.select %174, %172, %175 : vector<8x256xi1>, vector<8x256xf32>
    %177 = tpu.concatenate %148, %149, %154, %159, %160, %165, %170, %171, %176, %48 in 0 : vector<8x256xf32>, vector<8x256xf32>, vector<8x256xf32>, vector<8x256xf32>, vector<8x256xf32>, vector<8x256xf32>, vector<8x256xf32>, vector<8x256xf32>, vector<8x256xf32>, vector<1x256xf32> -> vector<73x256xf32>
    %178 = arith.truncf %177 : vector<73x256xf32> to vector<73x256xbf16>
    %c0_108 = arith.constant 0 : index
    %c0_109 = arith.constant 0 : index
    %179 = vector.load %arg4[%c0_108, %c0_109] : memref<16x73xbf16, #tpu.memory_space<vmem>>, vector<16x73xbf16>
    %cst_110 = arith.constant dense<0.000000e+00> : vector<16x256xf32>
    %180 = tpu.matmul %179, %178, %cst_110 {dimension_numbers = #tpu.dot_dimension_numbers<[1], [0], [0], [1], [0, 0, 1, 1], [], []>} : vector<16x73xbf16>, vector<73x256xbf16>, vector<16x256xf32> -> vector<16x256xf32>
    %181 = arith.truncf %180 : vector<16x256xf32> to vector<16x256xbf16>
    %c0_111 = arith.constant 0 : index
    %c0_112 = arith.constant 0 : index
    %182 = vector.load %arg10[%c0_111, %c0_112] : memref<256x64xbf16, #tpu.memory_space<vmem>>, vector<256x64xbf16>
    %cst_113 = arith.constant dense<0.000000e+00> : vector<16x64xf32>
    %183 = tpu.matmul %181, %182, %cst_113 {dimension_numbers = #tpu.dot_dimension_numbers<[1], [0], [0], [1], [0, 0, 1, 1], [], []>} : vector<16x256xbf16>, vector<256x64xbf16>, vector<16x64xf32> -> vector<16x64xf32>
    %cst_114 = arith.constant 0.000000e+00 : f32
    %184 = vector.broadcast %cst_114 : f32 to vector<16x64xf32>
    %185 = arith.maximumf %183, %184 : vector<16x64xf32>
    %c0_115 = arith.constant 0 : index
    %c9 = arith.constant 9 : index
    %186 = vector.load %arg14[%c0_115, %c9] : memref<16x82xf32, #tpu.memory_space<vmem>>, vector<16x64xf32>
    tpu.vector_store %arg14[%c0_115, %c9], %185 {strides = array<i32>} : memref<16x82xf32, #tpu.memory_space<vmem>>, vector<16x64xf32>,
    %c0_116 = arith.constant 0 : index
    %c0_117 = arith.constant 0 : index
    %187 = vector.load %arg14[%c0_116, %c0_117] : memref<16x82xf32, #tpu.memory_space<vmem>>, vector<16x64xf32>
    %cst_118 = arith.constant 0.000000e+00 : f32
    %188 = vector.shape_cast %45 : vector<1x64xi1> to vector<1x64xi1>
    %189 = vector.broadcast %188 : vector<1x64xi1> to vector<16x64xi1>
    %190 = vector.broadcast %cst_118 : f32 to vector<16x64xf32>
    %191 = arith.select %189, %187, %190 : vector<16x64xi1>, vector<16x64xf32>
    %c0_119 = arith.constant 0 : index
    %c1_120 = arith.constant 1 : index
    %192 = vector.load %arg14[%c0_119, %c1_120] : memref<16x82xf32, #tpu.memory_space<vmem>>, vector<16x64xf32>
    %c0_121 = arith.constant 0 : index
    %c2_122 = arith.constant 2 : index
    %193 = vector.load %arg14[%c0_121, %c2_122] : memref<16x82xf32, #tpu.memory_space<vmem>>, vector<16x64xf32>
    %cst_123 = arith.constant 0.000000e+00 : f32
    %194 = vector.shape_cast %47 : vector<1x64xi1> to vector<1x64xi1>
    %195 = vector.broadcast %194 : vector<1x64xi1> to vector<16x64xi1>
    %196 = vector.broadcast %cst_123 : f32 to vector<16x64xf32>
    %197 = arith.select %195, %193, %196 : vector<16x64xi1>, vector<16x64xf32>
    %c0_124 = arith.constant 0 : index
    %c8 = arith.constant 8 : index
    %198 = vector.load %arg14[%c0_124, %c8] : memref<16x82xf32, #tpu.memory_space<vmem>>, vector<16x64xf32>
    %cst_125 = arith.constant 0.000000e+00 : f32
    %199 = vector.shape_cast %45 : vector<1x64xi1> to vector<1x64xi1>
    %200 = vector.broadcast %199 : vector<1x64xi1> to vector<16x64xi1>
    %201 = vector.broadcast %cst_125 : f32 to vector<16x64xf32>
    %202 = arith.select %200, %198, %201 : vector<16x64xi1>, vector<16x64xf32>
    %c0_126 = arith.constant 0 : index
    %c9_127 = arith.constant 9 : index
    %203 = vector.load %arg14[%c0_126, %c9_127] : memref<16x82xf32, #tpu.memory_space<vmem>>, vector<16x64xf32>
    %c0_128 = arith.constant 0 : index
    %c10 = arith.constant 10 : index
    %204 = vector.load %arg14[%c0_128, %c10] : memref<16x82xf32, #tpu.memory_space<vmem>>, vector<16x64xf32>
    %cst_129 = arith.constant 0.000000e+00 : f32
    %205 = vector.shape_cast %47 : vector<1x64xi1> to vector<1x64xi1>
    %206 = vector.broadcast %205 : vector<1x64xi1> to vector<16x64xi1>
    %207 = vector.broadcast %cst_129 : f32 to vector<16x64xf32>
    %208 = arith.select %206, %204, %207 : vector<16x64xi1>, vector<16x64xf32>
    %c0_130 = arith.constant 0 : index
    %c16_131 = arith.constant 16 : index
    %209 = vector.load %arg14[%c0_130, %c16_131] : memref<16x82xf32, #tpu.memory_space<vmem>>, vector<16x64xf32>
    %cst_132 = arith.constant 0.000000e+00 : f32
    %210 = vector.shape_cast %45 : vector<1x64xi1> to vector<1x64xi1>
    %211 = vector.broadcast %210 : vector<1x64xi1> to vector<16x64xi1>
    %212 = vector.broadcast %cst_132 : f32 to vector<16x64xf32>
    %213 = arith.select %211, %209, %212 : vector<16x64xi1>, vector<16x64xf32>
    %c0_133 = arith.constant 0 : index
    %c17_134 = arith.constant 17 : index
    %214 = vector.load %arg14[%c0_133, %c17_134] : memref<16x82xf32, #tpu.memory_space<vmem>>, vector<16x64xf32>
    %c0_135 = arith.constant 0 : index
    %c18_136 = arith.constant 18 : index
    %215 = vector.load %arg14[%c0_135, %c18_136] : memref<16x82xf32, #tpu.memory_space<vmem>>, vector<16x64xf32>
    %cst_137 = arith.constant 0.000000e+00 : f32
    %216 = vector.shape_cast %47 : vector<1x64xi1> to vector<1x64xi1>
    %217 = vector.broadcast %216 : vector<1x64xi1> to vector<16x64xi1>
    %218 = vector.broadcast %cst_137 : f32 to vector<16x64xf32>
    %219 = arith.select %217, %215, %218 : vector<16x64xi1>, vector<16x64xf32>
    %220 = tpu.concatenate %191, %192, %197, %202, %203, %208, %213, %214, %219, %49 in 0 : vector<16x64xf32>, vector<16x64xf32>, vector<16x64xf32>, vector<16x64xf32>, vector<16x64xf32>, vector<16x64xf32>, vector<16x64xf32>, vector<16x64xf32>, vector<16x64xf32>, vector<1x64xf32> -> vector<145x64xf32>
    %221 = arith.truncf %220 : vector<145x64xf32> to vector<145x64xbf16>
    %c0_138 = arith.constant 0 : index
    %c0_139 = arith.constant 0 : index
    %222 = vector.load %arg5[%c0_138, %c0_139] : memref<16x145xbf16, #tpu.memory_space<vmem>>, vector<16x145xbf16>
    %cst_140 = arith.constant dense<0.000000e+00> : vector<16x64xf32>
    %223 = tpu.matmul %222, %221, %cst_140 {dimension_numbers = #tpu.dot_dimension_numbers<[1], [0], [0], [1], [0, 0, 1, 1], [], []>} : vector<16x145xbf16>, vector<145x64xbf16>, vector<16x64xf32> -> vector<16x64xf32>
    %cst_141 = arith.constant 0.000000e+00 : f32
    %224 = vector.broadcast %cst_141 : f32 to vector<16x64xf32>
    %225 = arith.maximumf %223, %224 : vector<16x64xf32>
    %c0_142 = arith.constant 0 : index
    %c0_143 = arith.constant 0 : index
    %226 = vector.load %arg8[%c0_142, %c0_143] : memref<32x16xbf16, #tpu.memory_space<vmem>>, vector<32x16xbf16>
    %227 = arith.truncf %225 : vector<16x64xf32> to vector<16x64xbf16>
    %cst_144 = arith.constant dense<0.000000e+00> : vector<32x64xf32>
    %228 = tpu.matmul %226, %227, %cst_144 {dimension_numbers = #tpu.dot_dimension_numbers<[1], [0], [0], [1], [0, 0, 1, 1], [], []>} : vector<32x16xbf16>, vector<16x64xbf16>, vector<32x64xf32> -> vector<32x64xf32>
    %c0_145 = arith.constant 0 : index
    %c0_146 = arith.constant 0 : index
    %229 = vector.load %arg9[%c0_145, %c0_146] : memref<32x1xf32, #tpu.memory_space<vmem>>, vector<32x1xf32>
    %230 = vector.broadcast %229 : vector<32x1xf32> to vector<32x64xf32>
    %231 = arith.addf %228, %230 : vector<32x64xf32>
    %cst_147 = arith.constant 0.000000e+00 : f32
    %232 = vector.broadcast %cst_147 : f32 to vector<32x64xf32>
    %233 = arith.maximumf %231, %232 : vector<32x64xf32>
    %234 = arith.truncf %233 : vector<32x64xf32> to vector<32x64xbf16>
    %235 = vector.extract_strided_slice %234 {offsets = [0, 0], sizes = [8, 64], strides = [1, 1]} : vector<32x64xbf16> to vector<8x64xbf16>
    %c0_148 = arith.constant 0 : index
    %c0_149 = arith.constant 0 : index
    %c0_150 = arith.constant 0 : index
    %236 = vector.load %arg11[%c0_148, %c0_149, %c0_150] : memref<4x64x256xbf16, #tpu.memory_space<vmem>>, vector<1x64x256xbf16>
    %237 = vector.shape_cast %236 : vector<1x64x256xbf16> to vector<64x256xbf16>
    %cst_151 = arith.constant dense<0.000000e+00> : vector<8x256xf32>
    %238 = tpu.matmul %235, %237, %cst_151 {dimension_numbers = #tpu.dot_dimension_numbers<[1], [0], [0], [1], [0, 0, 1, 1], [], []>} : vector<8x64xbf16>, vector<64x256xbf16>, vector<8x256xf32> -> vector<8x256xf32>
    %239 = vector.extract_strided_slice %234 {offsets = [8, 0], sizes = [8, 64], strides = [1, 1]} : vector<32x64xbf16> to vector<8x64xbf16>
    %c1_152 = arith.constant 1 : index
    %c0_153 = arith.constant 0 : index
    %c0_154 = arith.constant 0 : index
    %240 = vector.load %arg11[%c1_152, %c0_153, %c0_154] : memref<4x64x256xbf16, #tpu.memory_space<vmem>>, vector<1x64x256xbf16>
    %241 = vector.shape_cast %240 : vector<1x64x256xbf16> to vector<64x256xbf16>
    %cst_155 = arith.constant dense<0.000000e+00> : vector<8x256xf32>
    %242 = tpu.matmul %239, %241, %cst_155 {dimension_numbers = #tpu.dot_dimension_numbers<[1], [0], [0], [1], [0, 0, 1, 1], [], []>} : vector<8x64xbf16>, vector<64x256xbf16>, vector<8x256xf32> -> vector<8x256xf32>
    %243 = arith.addf %238, %242 : vector<8x256xf32>
    %244 = vector.extract_strided_slice %234 {offsets = [16, 0], sizes = [8, 64], strides = [1, 1]} : vector<32x64xbf16> to vector<8x64xbf16>
    %c2_156 = arith.constant 2 : index
    %c0_157 = arith.constant 0 : index
    %c0_158 = arith.constant 0 : index
    %245 = vector.load %arg11[%c2_156, %c0_157, %c0_158] : memref<4x64x256xbf16, #tpu.memory_space<vmem>>, vector<1x64x256xbf16>
    %246 = vector.shape_cast %245 : vector<1x64x256xbf16> to vector<64x256xbf16>
    %cst_159 = arith.constant dense<0.000000e+00> : vector<8x256xf32>
    %247 = tpu.matmul %244, %246, %cst_159 {dimension_numbers = #tpu.dot_dimension_numbers<[1], [0], [0], [1], [0, 0, 1, 1], [], []>} : vector<8x64xbf16>, vector<64x256xbf16>, vector<8x256xf32> -> vector<8x256xf32>
    %248 = arith.addf %243, %247 : vector<8x256xf32>
    %249 = vector.extract_strided_slice %234 {offsets = [24, 0], sizes = [8, 64], strides = [1, 1]} : vector<32x64xbf16> to vector<8x64xbf16>
    %c3 = arith.constant 3 : index
    %c0_160 = arith.constant 0 : index
    %c0_161 = arith.constant 0 : index
    %250 = vector.load %arg11[%c3, %c0_160, %c0_161] : memref<4x64x256xbf16, #tpu.memory_space<vmem>>, vector<1x64x256xbf16>
    %251 = vector.shape_cast %250 : vector<1x64x256xbf16> to vector<64x256xbf16>
    %cst_162 = arith.constant dense<0.000000e+00> : vector<8x256xf32>
    %252 = tpu.matmul %249, %251, %cst_162 {dimension_numbers = #tpu.dot_dimension_numbers<[1], [0], [0], [1], [0, 0, 1, 1], [], []>} : vector<8x64xbf16>, vector<64x256xbf16>, vector<8x256xf32> -> vector<8x256xf32>
    %253 = arith.addf %248, %252 : vector<8x256xf32>
    %c0_163 = arith.constant 0 : index
    %c8_164 = arith.constant 8 : index
    %c0_165 = arith.constant 0 : index
    %254 = vector.load %arg12[%c0_163, %c8_164, %c0_165] : memref<1x16x256xf32, #tpu.memory_space<vmem>>, vector<1x8x256xf32>
    %255 = vector.shape_cast %254 : vector<1x8x256xf32> to vector<8x256xf32>
    %256 = vector.shape_cast %253 : vector<8x256xf32> to vector<1x8x256xf32>
    tpu.vector_store %arg12[%c0_163, %c8_164, %c0_165], %256 {strides = array<i32>} : memref<1x16x256xf32, #tpu.memory_space<vmem>>, vector<1x8x256xf32>,
    return
  }
  func.func @transform_0(%arg0: i32) -> (i32, i32, i32) {
    %c0_i32 = arith.constant 0 : i32
    %c0_i32_0 = arith.constant 0 : i32
    %c0_i32_1 = arith.constant 0 : i32
    return %arg0, %c0_i32, %c0_i32_0 : i32, i32, i32
  }
  func.func @transform_1(%arg0: i32) -> (i32, i32) {
    %c0_i32 = arith.constant 0 : i32
    %c0_i32_0 = arith.constant 0 : i32
    %c0_i32_1 = arith.constant 0 : i32
    return %c0_i32, %c0_i32_0 : i32, i32
  }
  func.func @transform_2(%arg0: i32) -> (i32, i32) {
    %c0_i32 = arith.constant 0 : i32
    %c0_i32_0 = arith.constant 0 : i32
    %c0_i32_1 = arith.constant 0 : i32
    return %c0_i32, %c0_i32_0 : i32, i32
  }
  func.func @transform_3(%arg0: i32) -> (i32, i32) {
    %c0_i32 = arith.constant 0 : i32
    %c0_i32_0 = arith.constant 0 : i32
    %c0_i32_1 = arith.constant 0 : i32
    return %c0_i32, %c0_i32_0 : i32, i32
  }
  func.func @transform_4(%arg0: i32) -> (i32, i32) {
    %c0_i32 = arith.constant 0 : i32
    %c0_i32_0 = arith.constant 0 : i32
    %c0_i32_1 = arith.constant 0 : i32
    return %c0_i32, %c0_i32_0 : i32, i32
  }
  func.func @transform_5(%arg0: i32) -> (i32, i32) {
    %c0_i32 = arith.constant 0 : i32
    %c0_i32_0 = arith.constant 0 : i32
    %c0_i32_1 = arith.constant 0 : i32
    return %c0_i32, %c0_i32_0 : i32, i32
  }
  func.func @transform_6(%arg0: i32) -> (i32, i32) {
    %c0_i32 = arith.constant 0 : i32
    %c0_i32_0 = arith.constant 0 : i32
    %c0_i32_1 = arith.constant 0 : i32
    return %c0_i32, %c0_i32_0 : i32, i32
  }
  func.func @transform_7(%arg0: i32) -> (i32, i32) {
    %c0_i32 = arith.constant 0 : i32
    %c0_i32_0 = arith.constant 0 : i32
    %c0_i32_1 = arith.constant 0 : i32
    return %c0_i32, %c0_i32_0 : i32, i32
  }
  func.func @transform_8(%arg0: i32) -> (i32, i32) {
    %c0_i32 = arith.constant 0 : i32
    %c0_i32_0 = arith.constant 0 : i32
    %c0_i32_1 = arith.constant 0 : i32
    return %c0_i32, %c0_i32_0 : i32, i32
  }
  func.func @transform_9(%arg0: i32) -> (i32, i32) {
    %c0_i32 = arith.constant 0 : i32
    %c0_i32_0 = arith.constant 0 : i32
    %c0_i32_1 = arith.constant 0 : i32
    return %c0_i32, %c0_i32_0 : i32, i32
  }
  func.func @transform_10(%arg0: i32) -> (i32, i32, i32) {
    %c0_i32 = arith.constant 0 : i32
    %c0_i32_0 = arith.constant 0 : i32
    %c0_i32_1 = arith.constant 0 : i32
    %c0_i32_2 = arith.constant 0 : i32
    return %c0_i32, %c0_i32_0, %c0_i32_1 : i32, i32, i32
  }
  func.func @transform_11(%arg0: i32) -> (i32, i32, i32) {
    %c0_i32 = arith.constant 0 : i32
    %c0_i32_0 = arith.constant 0 : i32
    %c0_i32_1 = arith.constant 0 : i32
    return %arg0, %c0_i32, %c0_i32_0 : i32, i32, i32
  }
}

</mosaic_0001>

<bundles_post_ra>
// kernel: tpu_custom_call.1
= control target key start
LH: loop header
LB: loop body
LE: loop exit
PB: predicated region body
PF: predicated region fallthrough
CT: control target
= control target key end

     0   :  { %s3591_s0 = inlined_call_operand.vmem [shape: f32[2,4,256], index: 0, kind: input, shape index: {}]   ;;  %s3592_s1 = inlined_call_operand.vmem [shape: bf16[8,37], index: 1, kind: input, shape index: {}]   ;;  %s3593_s2 = inlined_call_operand.hbm [shape: bf16[8,73], index: 2, kind: input, shape index: {}]   ;;  %s3594_s3 = inlined_call_operand.hbm [shape: bf16[16,73], index: 3, kind: input, shape index: {}]   ;;  %s3595_s4 = inlined_call_operand.vmem [shape: bf16[16,145], index: 4, kind: input, shape index: {}]   ;;  %s3596_s5 = inlined_call_operand.hbm [shape: bf16[8,8], index: 5, kind: input, shape index: {}]   ;;  %s3597_s6 = inlined_call_operand.vmem [shape: f32[8,1], index: 6, kind: input, shape index: {}]   ;;  %s3598_s7 = inlined_call_operand.vmem [shape: bf16[32,16], index: 7, kind: input, shape index: {}]   ;;  %s3599_s8 = inlined_call_operand.vmem [shape: f32[32,1], index: 8, kind: input, shape index: {}]   ;;  %s3600_s9 = inlined_call_operand.vmem [shape: bf16[256,64], index: 9, kind: input, shape index: {}]   ;;  %s3601_s10 = inlined_call_operand.vmem [shape: bf16[4,64,256], index: 10, kind: input, shape index: {}]   ;;  %s3602_s11 = inlined_call_operand.hbm [shape: f32[2,16,256], index: 11, kind: output, shape index: {}]  }
   0x1   :  { %3622 = sst [smem:[#allocation20_spill]] %s3602_s11 }
   0x2   :  { %16 = vsyncpa [#allocation5], 0 }
   0x3   :  { %17 = vsyncpa [#allocation8], 0 }
   0x4   :  { %18 = vsyncpa [#allocation6], 0 }
   0x5   :  { %20 = vsyncpa [#allocation6 + $0x1], 0  ;;  %s2824_s17 = smov 0   ;;  %s2826_s18 = smov 0  }
   0x6   :  { %s2828_s19 = smov 0   ;;  %s2830_s20 = smov 0  }
   0x7 LB: > { %3623 = sst [smem:[#allocation14_spill]] %s2724_s17  ;;  %s2845_s21 = sadd.s32 4294967295, %s2736_s20   ;;  %s2736_s20 = sphi %s2830_s20, %s3681_s20   ;;  %s2732_s19 = sphi %s2828_s19, %s3683_s19   ;;  %s2728_s18 = sphi %s2826_s18, %s3685_s18   ;;  %s2724_s17 = sphi %s2824_s17, %s3684_s17  }
   0x8   : > { %3624 = sst [smem:[#allocation15_spill]] %s2732_s19  ;;  %s2039_s22 = sadd.s32 4294967294, %s2736_s20  }
   0x9   : > { %3625 = sst [smem:[#allocation16_spill]] %s2736_s20  ;;  %s2849_s23 = sadd.s32 1, %s2736_s20  }
   0xa   : > { %3626 = sst [smem:[#allocation17_spill]] %s2849_s23  ;;  %s269_s24 = sadd.s32 1, %s2732_s19 }
   0xb   : > { %s266_s25 = ssub.s32 %s2736_s20, %s2849_s23  ;;  %p279_p0 = scmp.ne.s32.totalorder %s2732_s19, %s2728_s18 }
   0xc   : > { %p267_p1 = scmp.eq.s32.totalorder %s266_s25, 0  ;;  %p280_p2 = scmp.eq.s32.totalorder %s2845_s21, 1 }
   0xd   : > { %p285_p3 = scmp.ne.s32.totalorder %s2728_s18, %s2724_s17  ;;  %p286_p4 = scmp.eq.s32.totalorder %s2039_s22, 1 }
   0xe   : > { %s2860_s26 = scalar_select %p267_p1, %s2732_s19, %s269_s24  }
   0xf   : > { %p2862_p5 = por %p280_p2, %p279_p0  ;;  %p2866_p6 = por %p286_p4, %p285_p3 }
  0x10   : > { %3627 = sst [smem:[#allocation18_spill]] %s2860_s26  ;;  %p2040_p7 = scmp.ge.s32.totalorder %s2736_s20, 1 }
  0x11   : > { %s3628_s27 = scalar_select %p2862_p5, 1, 0 }
  0x12   : > { %s3629_s28 = scalar_select %p2866_p6, 1, 0 }
  0x13   : > { %p293_p8 = scmp.lt.s32.totalorder %s2736_s20, 3  ;;  %p3606_p9 = scmp.eq.s32.totalorder %s2845_s21, 0 }
  0x14   : > { %3630 = sst [smem:[#allocation19_spill]] %s3629_s28  ;;  %s2738_s30 = smov [#allocation7]  }
  0x15   : > { %p2873_p10 = pnand %p2040_p7, %p293_p8  ;;  %s319_s12 = sshll.u32 %s2738_s30, 4  ;;  %s2879_s12 = int_to_ptr.vmem [resolvable:$true] %s319_s12 }
  0x16   : > { %s2739_s14 = smov [#allocation4]   ;;  %s2740_s16 = smov [#allocation9]  }
  0x17   : > { %s3631_s29 = scalar_select %p2873_p10, 1, 0 }
  0x18   : > { %p2271_p11 = pneg %p2873_p10  ;;  %s309_s15 = sshll.u32 %s2739_s14, 4  ;;  %s2887_s15 = int_to_ptr.vmem [resolvable:$true] %s309_s15 }
  0x19   : > { %s2889_s22 = sshll.u32 %s2740_s16, 4  ;;  %s2582_s30 = scalar_lea.hbm %s3594_s3, 128  ;;  %s337_s22 = int_to_ptr.vmem [resolvable:$true] %s2889_s22 }
  0x1a   : > { %p2883_p12 = pnand %p3606_p9, %p2271_p11  ;;  %p2583_p13 = scmp.ne.s32.totalorder %s3594_s3, %s2582_s30 }
  0x1b   : > { %p2589_p3 = scmp.lt.u32.totalorder %s2582_s30, %s3594_s3 }
  0x1c   : > { %p2899_p0 = pneg %p2883_p12 }
  0x1e   : > { %p2585_p1 = pnand %p2899_p0, %p2583_p13 }
  0x20   : > { %p2586_p2 = pneg %p2585_p1 }
  0x22   : > { %p2591_p4 = pnand %p2589_p3, %p2586_p2 }
  0x24   : > { %2594 = shalt.err (!%p2591_p4)
}
  0x25   : > { %s2595_s19 = scalar_lea.vmem %s2879_s12, 128  ;;  %p2603_p9 = scmp.lt.s32.totalorder %s2879_s12, %s2879_s12 }
  0x26   : > { %p2596_p7 = scmp.ne.s32.totalorder %s2879_s12, %s2595_s19  ;;  %p2604_p6 = scmp.lt.s32.totalorder %s2595_s19, %s2595_s19 }
  0x28   : > { %p2598_p8 = pnand %p2596_p7, %p2899_p0  ;;  %p2605_p13 = por %p2604_p6, %p2603_p9 }
  0x2a   : > { %p2599_p11 = pneg %p2598_p8 }
  0x2c   : > { %p2606_p1 = pnand %p2605_p13, %p2599_p11 }
  0x2e   : > { %2609 = shalt.err (!%p2606_p1)
}
  0x2f   : > { %s2741_s26 = smov 64   ;;  %s2742_s24 = smov 4  }
  0x30   : > { %2277 = dma.hbm_to_vmem [thread:$0]  (!%p2883_p12), %s3594_s3, 128, %s2879_s12, [#allocation8], %s2741_s26, %s2741_s26, %s2742_s24  }
  0x31   : > { %s2610_s28 = scalar_lea.hbm %s3593_s2, 64 }
  0x32   : > { %p2611_p6 = scmp.ne.s32.totalorder %s3593_s2, %s2610_s28  ;;  %p2617_p3 = scmp.lt.u32.totalorder %s2610_s28, %s3593_s2 }
  0x34   : > { %p2613_p9 = pnand %p2611_p6, %p2899_p0 }
  0x36   : > { %p2614_p2 = pneg %p2613_p9 }
  0x38   : > { %p2619_p4 = pnand %p2617_p3, %p2614_p2 }
  0x3a   : > { %2622 = shalt.err (!%p2619_p4)
}
  0x3b   : > { %s2623_s12 = scalar_lea.vmem %s2887_s15, 64  ;;  %p2631_p13 = scmp.lt.s32.totalorder %s2887_s15, %s2887_s15 }
  0x3c   : > { %p2624_p7 = scmp.ne.s32.totalorder %s2887_s15, %s2623_s12  ;;  %p2632_p1 = scmp.lt.s32.totalorder %s2623_s12, %s2623_s12 }
  0x3e   : > { %p2626_p8 = pnand %p2624_p7, %p2899_p0  ;;  %p2633_p6 = por %p2632_p1, %p2631_p13 }
  0x40   : > { %p2627_p11 = pneg %p2626_p8 }
  0x42   : > { %p2634_p9 = pnand %p2633_p6, %p2627_p11 }
  0x44   : > { %2637 = shalt.err (!%p2634_p9)
}
  0x45   : > { %2274 = dma.hbm_to_vmem [thread:$0]  (!%p2883_p12), %s3593_s2, 64, %s2887_s15, [#allocation5]  }
  0x46   : > { %s2638_s26 = scalar_lea.hbm %s3596_s5, 64 }
  0x47   : > { %p2639_p2 = scmp.ne.s32.totalorder %s3596_s5, %s2638_s26  ;;  %p2645_p7 = scmp.lt.u32.totalorder %s2638_s26, %s3596_s5 }
  0x49   : > { %p2641_p3 = pnand %p2639_p2, %p2899_p0 }
  0x4b   : > { %p2642_p4 = pneg %p2641_p3 }
  0x4d   : > { %p2647_p8 = pnand %p2645_p7, %p2642_p4 }
  0x4f   : > { %2650 = shalt.err (!%p2647_p8)
}
  0x50   : > { %s2651_s16 = scalar_lea.vmem %s337_s22, 64  ;;  %p2659_p6 = scmp.lt.s32.totalorder %s337_s22, %s337_s22 }
  0x51   : > { %p2652_p11 = scmp.ne.s32.totalorder %s337_s22, %s2651_s16  ;;  %p2660_p9 = scmp.lt.s32.totalorder %s2651_s16, %s2651_s16 }
  0x53   : > { %p2654_p13 = pnand %p2652_p11, %p2899_p0  ;;  %p2661_p5 = por %p2660_p9, %p2659_p6 }
  0x55   : > { %p2655_p1 = pneg %p2654_p13 }
  0x57   : > { %p2662_p10 = pnand %p2661_p5, %p2655_p1 }
  0x59   : > { %2665 = shalt.err (!%p2662_p10)
}
  0x5a   : > { %2280 = dma.hbm_to_vmem [thread:$0]  (!%p2883_p12), %s3596_s5, 64, %s337_s22, [#allocation8]  }
  0x5b   : > { %p3634_p2 = scmp.ne.s32.totalorder %s3631_s29, 0 }
  0x5c   : > { %p3635_p3 = scmp.eq.s32.totalorder (!%p3634_p2), %s2845_s21, 0 }
  0x5d   : > { %372 = sbr.rel (%p3634_p2) target bundleno = 2810 (0xafa), region = 64 }
  0x64   : > { %2711 = dma.done.wait (%p3635_p3), [#allocation5], 64   ;;  %p3636_p0 = pmov %p3635_p3 }
  0x66   : > { %2713 = vsyncadd (%p3636_p0), [#allocation5], 4294967232  ;;  %p3637_p4 = pmov %p3636_p0 }
  0x67   : > { %p3638_p5 = pmov %p3636_p0 }
  0x68   : > { %2715 = dma.done.wait (%p3637_p4), [#allocation8], 192  }
  0x69   : > { %2717 = vsyncadd (%p3638_p5), [#allocation8], 4294967104  ;;  %p420_p10 = scmp.lt.s32.totalorder %s2845_s21, 1  ;;  %vm3613_vm0 = vcmask 138240   ;;  %v2743_v0 = vmov 0.0   ;;  %vm428_vm1 = vcmask 277640   ;;  %v436_v15 = vlaneseq }
  0x6a   : > { %427 = vst.msk [vmem:[#allocation2] sm:$0xff] %vm3613_vm0, %v2743_v0  ;;  %s2744_s11 = smov 17   ;;  %vm492_vm2 = vcmask 1043592   ;;  %vm495_vm3 = vcmask 134144   ;;  %s2745_s17 = smov 112   ;;  %v2753_v14 = vmov 0  }
  0x6b   : > { %s421_s23 = scalar_select %p420_p10, %s2845_s21, 1  ;;  %429 = vst.msk [vmem:[#allocation2 + $0x10] sm:$0xff] %vm428_vm1, %v2743_v0  ;;  %690 = vmatprep.mubr.bf16.mxu0 %v2753_v14  ;;  %2509 = vset.pattern.permute.xlu0 %v2753_v14  ;;  %v3015_v18 = vand.u32 127, %v436_v15  ;;  %vm558_vm6 = vcmask 785408   ;;  %vm519_vm9 = vcmask 1031168   ;;  %vm3616_vm10 = vcmask 916480  }
  0x6c   : > { %s2746_s20 = smov 127   ;;  %s2747_s28 = smov 126   ;;  %2510 = vset.pattern.permute.xlu1 %v2753_v14  ;;  %vm3619_vm11 = vcmask 900096   ;;  %vm626_vm12 = vcmask 1043456   ;;  %vm3615_vm13 = vcmask 1039360   ;;  %vm3621_vm14 = vcmask 769024  }
  0x6d   : > { %s2212_s29 = sshll.u32 %s421_s23, 3  ;;  %s2748_s26 = smov 110   ;;  %v438_v20 = vadd.s32 128, %v3015_v18  ;;  %v443_v23 = vand.u32 15, %v3015_v18  ;;  %vm648_vm15 = vcmask 1041408   ;;  %vm649_vm1 = vcmask 1042432  }
  0x6e   : > { %s424_s12 = scalar_lea.vmem %s3591_s0, %s2212_s29  ;;  %s2749_s24 = smov 96  }
  0x6f   : > { %v481_v1 = vld [vmem:[%s424_s12] sm:$0xff]  ;;  %s2750_s25 = smov 111   ;;  %s2751_s30 = smov 94   ;;  %v450_v24 = vand.u32 15, %v438_v20  ;;  %vm3019_vm4 = vcmp.ge.s32.totalorder %v443_v23, 1  ;;  %vm3027_vm7 = vcmp.le.s32.totalorder %v443_v23, 14 }
  0x70   : > { %484 = vrot.lane.b32.xlu0 %v481_v1, %s2744_s11  ;;  %v483_v2 = vcombine.high %v481_v1, %v481_v1  ;;  %s2752_s14 = smov 95   ;;  %s2757_s16 = smov 9  }
  0x71   : > { %vm3023_vm5 = vcmp.ge.s32.totalorder %v450_v24, 1  ;;  %vm3033_vm8 = vcmp.le.s32.totalorder %v450_v24, 14  ;;  %s2758_s15 = smov 119   ;;  %s2759_s19 = smov 120  }
  0x72   : > { %s2213_s12 = sshll.u32 %s2845_s21, 9  ;;  %p3676_p7 = scmp.ne.s32.totalorder %s3628_s27, 0 }
  0x74   : > { %486 = vrot.lane.b32.xlu0 %v483_v2, %s2744_s11 }
  0xe2   : > { %v485_v3 = vpop.permute.xlu0 %484 }
  0xe3   : > { %493 = vst.msk [vmem:[#allocation2] sm:$0xf] %vm492_vm2, %v485_v3  ;;  %vm3617_vm2 = vcmask 908288  }
  0xe6   : > { %v487_v4 = vpop.permute.xlu0 %486 }
  0xe7   : > { %v488_v5 = vsel %vm3613_vm0, %v485_v3, %v487_v4  ;;  %496 = vst.msk [vmem:[#allocation2 + $0x10] sm:$0xf] %vm495_vm3, %v487_v4  ;;  %v2754_v4 = vmov 65535   ;;  %vm621_vm3 = vcmask 777216  }
  0xe8   : > { %494 = vst [vmem:[#allocation2 + $0x8] sm:$0xf] %v488_v5  ;;  %v650_v5 = vsel %vm648_vm15, 4294967295, %v2754_v4  ;;  %vm644_vm15 = vcmask 302080  }
  0xea   : > { %v2983_v6 = vld [vmem:[#allocation2] sm:$0xf] }
  0xeb   : > { %526 = vrot.lane.b32.xlu1 %v2983_v6, %s2745_s17  ;;  %v578_v7 = vrot.slane %v2983_v6, 4  ;;  %v503_v36 = vsel %vm3019_vm4, %v2983_v6, 0.0 }
  0xed   : > { %581 = vrot.lane.b32.xlu0 %v578_v7, %s2746_s20 }
  0xee   : > { %v505_v8 = vld [vmem:[#allocation2 + $0x10] sm:$0xf] }
  0xef   : > { %513 = vrot.lane.b32.xlu1 %v2983_v6, %s2747_s28  ;;  %v2991_v9 = vld [vmem:[#allocation2 + $0x8] sm:$0xf]  ;;  %v580_v12 = vrot.slane %v505_v8, 4 }
  0xf0   : > { %v2354_v10 = vpack.i.bf16 %v505_v8, %v2991_v9  ;;  %v579_v11 = vrot.slane %v2991_v9, 4  ;;  %v504_v35 = vsel %vm3023_vm5, %v2991_v9, 0.0 }
  0xf2   : > { %2355 = vrot.lane.b32.xlu0 %v2354_v10, %s2747_s28  ;;  %v2374_v13 = vpack.i.bf16 %v580_v12, %v579_v11 }
  0xf3   : > { %539 = vrot.lane.b32.xlu1 %v2983_v6, %s2748_s26 }
  0xf6   : > { %2365 = vrot.lane.b32.xlu0 %v2354_v10, %s2749_s24 }
  0xf7   : > { %552 = vrot.lane.b32.xlu1 %v2983_v6, %s2749_s24 }
  0xfa   : > { %2370 = vrot.lane.b32.xlu0 %v2354_v10, %s2750_s25 }
  0xfb   : > { %2350 = vrot.lane.b32.xlu1 %v2354_v10, %s2745_s17 }
  0xfe   : > { %2375 = vrot.lane.b32.xlu0 %v2374_v13, %s2746_s20 }
  0xff   : > { %2360 = vrot.lane.b32.xlu1 %v2354_v10, %s2748_s26 }
 0x102   : > { %2380 = vrot.lane.b32.xlu0 %v2354_v10, %s2751_s30 }
 0x103   : > { %598 = vrot.lane.b32.xlu1 %v2983_v6, %s2750_s25 }
 0x106   : > { %615 = vrot.lane.b32.xlu0 %v578_v7, %s2752_s14 }
 0x107   : > { %2385 = vrot.lane.b32.xlu1 %v2374_v13, %s2752_s14 }
 0x10b   : > { %565 = vrot.lane.b32.xlu1 %v2983_v6, %s2751_s30 }
 0x15d   : > { %v527_v16 = vpop.permute.xlu1 %526 }
 0x15f   : > { %v582_v17 = vpop.permute.xlu0 %581 }
 0x161   : > { %v514_v19 = vpop.permute.xlu1 %513 }
 0x164   : > { %v2356_v21 = vpop.permute.xlu0 %2355 }
 0x165   : > { %v540_v22 = vpop.permute.xlu1 %539  ;;  %v2358_v29 = vunpack.i.h.bf16 %v2356_v21  ;;  %v2357_v30 = vunpack.i.l.bf16 %v2356_v21 }
 0x167   : > { %v521_v39 = vsel %vm519_vm9, %v2357_v30, %v2358_v29  ;;  %v520_v44 = vsel %vm519_vm9, %v514_v19, %v2357_v30 }
 0x168   : > { %v2366_v25 = vpop.permute.xlu0 %2365  ;;  %v525_v54 = vsel %vm3033_vm8, %v521_v39, 0.0  ;;  %v524_v3 = vsel %vm3027_vm7, %v520_v44, 0.0 }
 0x169   : > { %v553_v26 = vpop.permute.xlu1 %552  ;;  %v2368_v40 = vunpack.i.h.bf16 %v2366_v25  ;;  %v2367_v50 = vunpack.i.l.bf16 %v2366_v25 }
 0x16b   : > { %v560_v6 = vsel %vm558_vm6, %v2367_v50, %v2368_v40  ;;  %v559_v10 = vsel %vm558_vm6, %v553_v26, %v2367_v50 }
 0x16c   : > { %v3031_v32 = vpop.permute.xlu0 %2370  ;;  %v563_v29 = vsel %vm3019_vm4, %v559_v10, 0.0 }
 0x16d   : > { %v2351_v34 = vpop.permute.xlu1 %2350  ;;  %v2373_v15 = vunpack.i.h.bf16 %v3031_v32 }
 0x16e   : > { %v2353_v37 = vunpack.i.h.bf16 %v2351_v34  ;;  %v2352_v38 = vunpack.i.l.bf16 %v2351_v34  ;;  %v651_v34 = vsel %vm649_vm1, %v650_v5, 0  ;;  %vm3614_vm1 = vcmask 1047688  }
 0x170   : > { %v533_v41 = vsel %vm3616_vm10, %v527_v16, %v2352_v38  ;;  %v534_v42 = vsel %vm3616_vm10, %v2352_v38, %v2353_v37  ;;  %v2376_v43 = vpop.permute.xlu0 %2375  ;;  %v2372_v16 = vunpack.i.l.bf16 %v3031_v32  ;;  %v564_v32 = vsel %vm3023_vm5, %v560_v6, 0.0 }
 0x171   : > { %v2378_v45 = vunpack.i.h.bf16 %v2376_v43  ;;  %v2377_v46 = vunpack.i.l.bf16 %v2376_v43  ;;  %v2361_v47 = vpop.permute.xlu1 %2360  ;;  %v538_v48 = vsel %vm3023_vm5, %v534_v42, 0.0  ;;  %v537_v49 = vsel %vm3019_vm4, %v533_v41, 0.0 }
 0x172   : > { %v2363_v51 = vunpack.i.h.bf16 %v2361_v47  ;;  %v2362_v52 = vunpack.i.l.bf16 %v2361_v47  ;;  %v595_v53 = vrot.slane %v538_v48, 4  ;;  %v594_v57 = vrot.slane %v537_v49, 4 }
 0x173   : > { %v589_v55 = vsel %vm3615_vm13, %v2377_v46, %v2378_v45  ;;  %v588_v56 = vsel %vm3615_vm13, %v582_v17, %v2377_v46 }
 0x174   : > { %v546_v58 = vsel %vm3619_vm11, %v540_v22, %v2362_v52  ;;  %v547_v59 = vsel %vm3619_vm11, %v2362_v52, %v2363_v51  ;;  %v2381_v60 = vpop.permute.xlu0 %2380  ;;  %v628_v61 = vsel %vm626_vm12, %v504_v35, %v589_v55  ;;  %v630_v62 = vsel %vm626_vm12, %v525_v54, %v595_v53  ;;  %v643_v52 = vld [vmem:[%s3592_s1] sm:$0xf] }
 0x175   : > { %v2383_v63 = vunpack.i.h.bf16 %v2381_v60  ;;  %v2382_v1 = vunpack.i.l.bf16 %v2381_v60  ;;  %v599_v2 = vpop.permute.xlu1 %598  ;;  %v550_v7 = vsel %vm3027_vm7, %v546_v58, 0.0  ;;  %v551_v8 = vsel %vm3033_vm8, %v547_v59, 0.0 }
 0x176   : > { %v638_v9 = vpack.c.bf16 %v630_v62, %v628_v61  ;;  %v627_v12 = vsel %vm626_vm12, %v503_v36, %v588_v56  ;;  %v629_v13 = vsel %vm626_vm12, %v524_v3, %v594_v57  ;;  %v611_v20 = vrot.slane %v550_v7, 4 }
 0x177   : > { %v573_v11 = vsel %vm3621_vm14, %v2382_v1, %v2383_v63  ;;  %v637_v17 = vpack.c.bf16 %v629_v13, %v627_v12  ;;  %v612_v21 = vrot.slane %v551_v8, 4  ;;  %v605_v24 = vsel %vm3617_vm2, %v599_v2, %v2372_v16 }
 0x178   : > { %658 = vmatprep.subr.bf16.mxu0 %v638_v9  ;;  %v577_v19 = vsel %vm3033_vm8, %v573_v11, 0.0  ;;  %v616_v30 = vpop.permute.xlu0 %615  ;;  %v606_v35 = vsel %vm3617_vm2, %v2372_v16, %v2373_v15  ;;  %v631_v39 = vsel %vm626_vm12, %v605_v24, %v611_v20  ;;  %v2526_v24 = vld [vmem:[%s3600_s9 + $0x30] sm:$0xff]  }
 0x179   : > { %v2386_v22 = vpop.permute.xlu1 %2385  ;;  %v636_v23 = vsel %vm626_vm12, %v577_v19, 1.0  ;;  %659 = vmatpush1.bf16.msra.mxu0 %v637_v17  ;;  %v632_v41 = vsel %vm626_vm12, %v606_v35, %v612_v21 }
 0x17a   : > { %v2388_v25 = vunpack.i.h.bf16 %v2386_v22  ;;  %v2387_v26 = vunpack.i.l.bf16 %v2386_v22  ;;  %v642_v38 = vpack.c.bf16 %v636_v23, %v636_v23 }
 0x17c   : > { %v622_v36 = vsel %vm621_vm3, %v616_v30, %v2387_v26  ;;  %v623_v37 = vsel %vm621_vm3, %v2387_v26, %v2388_v25  ;;  %v656_v49 = vand.u32 %v651_v34, %v642_v38 }
 0x17d   : > { %v566_v40 = vpop.permute.xlu1 %565  ;;  %v634_v42 = vsel %vm626_vm12, %v564_v32, %v623_v37  ;;  %v633_v43 = vsel %vm626_vm12, %v563_v29, %v622_v36 }
 0x17e   : > { %v572_v44 = vsel %vm3621_vm14, %v566_v40, %v2382_v1  ;;  %v640_v45 = vpack.c.bf16 %v634_v42, %v632_v41  ;;  %v639_v46 = vpack.c.bf16 %v633_v43, %v631_v39 }
 0x17f   : > { %v576_v47 = vsel %vm3027_vm7, %v572_v44, 0.0 }
 0x180   : > { %v635_v48 = vsel %vm626_vm12, %v576_v47, 1.0  ;;  %660 = vmatprep.subr.bf16.mxu0 %v640_v45 }
 0x181   : > { %v641_v50 = vpack.c.bf16 %v635_v48, %v635_v48  ;;  %661 = vmatpush1.bf16.msra.mxu0 %v639_v46 }
 0x182   : > { %662 = vmatprep.subr.bf16.mxu0 %v656_v49 }
 0x183   : > { %v653_v51 = vand.u32 %v651_v34, %v641_v50  ;;  %v829_v50 = vsel %vm626_vm12, 4294967295, %v2754_v4 }
 0x185   : > { %663 = vmatpush1.bf16.msra.mxu0 %v653_v51 }
 0x188   : > { %2052 = vmatmul.mubr.msk.bf16.vlgmr.msra.gmra.mrb[0].mxu0 %vm644_vm15, %v643_v52  ;;  %vm2755_vm15 = vmmov 1  }
 0x189   : > { %869 = vmatprep.mubr.bf16.mxu0 %v2753_v14 }
 0x25b   : > { %v692_v53 = vpop.f32.mrb[0].mxu0 }
 0x25c   : > { %v699_v54 = vmax.f32 %v692_v53, 0.0  ;;  %v694_v55 = vpop.f32.mrb[1].mxu0 }
 0x25d   : > { %v700_v56 = vmax.f32 %v694_v55, 0.0  ;;  %v696_v57 = vpop.f32.mrb[2].mxu0 }
 0x25e   : > { %703 = vrot.lane.b32.xlu0 %v699_v54, %s2744_s11  ;;  %v697_v58 = vpop.f32.mrb[3].mxu0 }
 0x25f   : > { %705 = vrot.lane.b32.xlu1 %v700_v56, %s2744_s11 }
 0x2d0   : > { %v704_v59 = vpop.permute.xlu0 %703 }
 0x2d1   : > { %712 = vst.msk [vmem:[#allocation2] sm:$0xff] %vm3614_vm1, %v704_v59  ;;  %v706_v60 = vpop.permute.xlu1 %705  ;;  %vm3133_vm1 = vmpackc.low %vm2755_vm15, %vm3019_vm4 }
 0x2d2   : > { %714 = vst.msk [vmem:[#allocation2 + $0x10] sm:$0xff] %vm3613_vm0, %v706_v60  ;;  %v707_v63 = vsel %vm3613_vm0, %v704_v59, %v706_v60  ;;  %vm3126_vm0 = vmpackc.low %vm2755_vm15, %vm3023_vm5 }
 0x2d8   : > { %v715_v61 = vld [vmem:[#allocation2] sm:$0xff] }
 0x2d9   : > { %723 = vrot.lane.b32.xlu0 %v715_v61, %s2747_s28  ;;  %783 = vrot.lane.b32.xlu1 %v715_v61, %s2746_s20  ;;  %v719_v62 = vld [vmem:[#allocation2 + $0x10] sm:$0xff] }
 0x2da   : > { %v2399_v1 = vpack.i.bf16 %v719_v62, %v707_v63 }
 0x2dd   : > { %747 = vrot.lane.b32.xlu0 %v715_v61, %s2748_s26  ;;  %735 = vrot.lane.b32.xlu1 %v715_v61, %s2745_s17 }
 0x2e1   : > { %759 = vrot.lane.b32.xlu0 %v715_v61, %s2749_s24  ;;  %793 = vrot.lane.b32.xlu1 %v715_v61, %s2750_s25 }
 0x2e5   : > { %2400 = vrot.lane.b32.xlu1 %v2399_v1, %s2745_s17  ;;  %2390 = vrot.lane.b32.xlu0 %v2399_v1, %s2746_s20 }
 0x2e9   : > { %2410 = vrot.lane.b32.xlu1 %v2399_v1, %s2750_s25  ;;  %2395 = vrot.lane.b32.xlu0 %v2399_v1, %s2747_s28 }
 0x2ed   : > { %2420 = vrot.lane.b32.xlu1 %v2399_v1, %s2752_s14  ;;  %2405 = vrot.lane.b32.xlu0 %v2399_v1, %s2748_s26 }
 0x2f1   : > { %2425 = vrot.lane.b32.xlu1 %v2399_v1, %s2751_s30  ;;  %2415 = vrot.lane.b32.xlu0 %v2399_v1, %s2749_s24 }
 0x2f5   : > { %771 = vrot.lane.b32.xlu1 %v715_v61, %s2751_s30  ;;  %803 = vrot.lane.b32.xlu0 %v715_v61, %s2752_s14 }
 0x34b   : > { %v724_v2 = vpop.permute.xlu0 %723  ;;  %v784_v3 = vpop.permute.xlu1 %783 }
 0x34f   : > { %v748_v5 = vpop.permute.xlu0 %747  ;;  %v736_v6 = vpop.permute.xlu1 %735 }
 0x353   : > { %v3119_v7 = vpop.permute.xlu0 %759  ;;  %v794_v8 = vpop.permute.xlu1 %793 }
 0x357   : > { %v2391_v9 = vpop.permute.xlu0 %2390  ;;  %v2401_v10 = vpop.permute.xlu1 %2400 }
 0x358   : > { %v2393_v11 = vunpack.i.h.bf16 %v2391_v9  ;;  %v2392_v12 = vunpack.i.l.bf16 %v2391_v9  ;;  %v2403_v16 = vunpack.i.h.bf16 %v2401_v10  ;;  %v2402_v17 = vunpack.i.l.bf16 %v2401_v10 }
 0x359   : > { %v2756_v9 = vmov 1.0  }
 0x35a   : > { %v789_v13 = vsel %vm3615_vm13, %v784_v3, %v2392_v12  ;;  %v790_v15 = vsel %vm3615_vm13, %v2392_v12, %v2393_v11  ;;  %v741_v32 = vsel %vm3616_vm10, %v736_v6, %v2402_v17  ;;  %v742_v34 = vsel %vm3616_vm10, %v2402_v17, %v2403_v16  ;;  %vm3618_vm13 = vmpackc.low %vm3023_vm5, %vm3033_vm8  ;;  %v823_v16 = vld [vmem:[#allocation4] sm:$0xf] }
 0x35b   : > { %v2054_v20 = vpack.c.bf16 %v790_v15, %v707_v63  ;;  %v2057_v21 = vpack.c.bf16 %v789_v13, %v715_v61  ;;  %v2396_v22 = vpop.permute.xlu0 %2395  ;;  %v2411_v23 = vpop.permute.xlu1 %2410  ;;  %vm2062_vm10 = vmpackc.low %vm3019_vm4, %vm3027_vm7 }
 0x35c   : > { %v2398_v25 = vunpack.i.h.bf16 %v2396_v22  ;;  %v2397_v26 = vunpack.i.l.bf16 %v2396_v22  ;;  %v2413_v29 = vunpack.i.h.bf16 %v2411_v23  ;;  %v2412_v30 = vunpack.i.l.bf16 %v2411_v23 }
 0x35d   : > { %2055 = vmatprep.subr.msk.bf16.mxu0 %vm3126_vm0, %v2054_v20 }
 0x35e   : > { %v729_v35 = vsel %vm519_vm9, %v724_v2, %v2397_v26  ;;  %v730_v36 = vsel %vm519_vm9, %v2397_v26, %v2398_v25  ;;  %2058 = vmatpush1.bf16.msk.msra.mxu0 %vm3133_vm1, %v2057_v21  ;;  %v799_v43 = vsel %vm3617_vm2, %v794_v8, %v2412_v30  ;;  %v800_v44 = vsel %vm3617_vm2, %v2412_v30, %v2413_v29  ;;  %vm3170_vm2 = vmpackc.low %vm3033_vm8, %vm2755_vm15 }
 0x35f   : > { %v2060_v37 = vpack.c.bf16 %v742_v34, %v730_v36  ;;  %v2063_v38 = vpack.c.bf16 %v741_v32, %v729_v35  ;;  %v2406_v39 = vpop.permute.xlu0 %2405  ;;  %v2421_v40 = vpop.permute.xlu1 %2420 }
 0x360   : > { %v2408_v41 = vunpack.i.h.bf16 %v2406_v39  ;;  %v2407_v42 = vunpack.i.l.bf16 %v2406_v39  ;;  %v2423_v47 = vunpack.i.h.bf16 %v2421_v40  ;;  %v2422_v48 = vunpack.i.l.bf16 %v2421_v40  ;;  %v2513_v40 = vld [vmem:[%s3600_s9 + $0x40] sm:$0xff]  }
 0x361   : > { %2061 = vmatprep.subr.msk.bf16.mxu0 %vm3618_vm13, %v2060_v37  ;;  %vm828_vm13 = vcmask 1044480   ;;  %v880_v37 = vld [vmem:[#allocation9] sm:$0xf]  ;;  %2214 = vmatprep.subr.bf16.mxu1 %v2513_v40 }
 0x362   : > { %v753_v45 = vsel %vm3619_vm11, %v748_v5, %v2407_v42  ;;  %v754_v46 = vsel %vm3619_vm11, %v2407_v42, %v2408_v41  ;;  %2064 = vmatpush1.bf16.msk.msra.mxu0 %vm2062_vm10, %v2063_v38  ;;  %vm3179_vm11 = vmpackc.low %vm3027_vm7, %vm2755_vm15  ;;  %v810_v4 = vsel %vm621_vm3, %v2422_v48, %v2423_v47  ;;  %v3191_v62 = vsel %vm828_vm13, %v829_v50, 0  ;;  %v2514_v41 = vld [vmem:[%s3600_s9] sm:$0xff]   ;;  %v2515_v42 = vld [vmem:[%s3600_s9 + $0x48] sm:$0xff]  }
 0x363   : > { %v2066_v51 = vpack.c.bf16 %v754_v46, %v800_v44  ;;  %v2069_v52 = vpack.c.bf16 %v753_v45, %v799_v43  ;;  %v2416_v53 = vpop.permute.xlu0 %2415  ;;  %v2426_v54 = vpop.permute.xlu1 %2425  ;;  %vm3620_vm13 = vcmask 596992   ;;  %vm3655_vm15 = vcmask 1047688   ;;  %2215 = vmatpush3.bf16.msra.mxu1 %v2514_v41  ;;  %v2516_v43 = vld [vmem:[%s3600_s9 + $0x8] sm:$0xff]   ;;  %v2517_v44 = vld [vmem:[%s3600_s9 + $0x50] sm:$0xff]   ;;  %v2519_v46 = vld [vmem:[%s3600_s9 + $0x58] sm:$0xff]  }
 0x364   : > { %v2418_v56 = vunpack.i.h.bf16 %v2416_v53  ;;  %v2417_v57 = vunpack.i.l.bf16 %v2416_v53  ;;  %v2428_v58 = vunpack.i.h.bf16 %v2426_v54  ;;  %v2427_v59 = vunpack.i.l.bf16 %v2426_v54  ;;  %2216 = vmatprep.subr.bf16.mxu1 %v2515_v42  ;;  %v2518_v45 = vld [vmem:[%s3600_s9 + $0x10] sm:$0xff]   ;;  %v2520_v47 = vld [vmem:[%s3600_s9 + $0x18] sm:$0xff]   ;;  %v2522_v50 = vld [vmem:[%s3600_s9 + $0x20] sm:$0xff]  }
 0x365   : > { %2067 = vmatprep.subr.msk.bf16.mxu0 %vm3170_vm2, %v2066_v51  ;;  %v2523_v51 = vld [vmem:[%s3600_s9 + $0x68] sm:$0xff]   ;;  %v2525_v53 = vld [vmem:[%s3600_s9 + $0x70] sm:$0xff]  }
 0x366   : > { %v766_v60 = vsel %vm558_vm6, %v2417_v57, %v2418_v56  ;;  %v778_v61 = vsel %vm3621_vm14, %v2427_v59, %v2428_v58  ;;  %2070 = vmatpush1.bf16.msk.msra.mxu0 %vm3179_vm11, %v2069_v52  ;;  %v765_v5 = vsel %vm558_vm6, %v3119_v7, %v2417_v57  ;;  %v2524_v52 = vld [vmem:[%s3600_s9 + $0x28] sm:$0xff]  }
 0x367   : > { %v2072_v63 = vpack.c.bf16 %v810_v4, %v766_v60  ;;  %v804_v1 = vpop.permute.xlu0 %803  ;;  %v772_v2 = vpop.permute.xlu1 %771  ;;  %v782_v3 = vsel %vm3033_vm8, %v778_v61, 0.0  ;;  %2217 = vmatpush3.bf16.msra.mxu1 %v2516_v43 }
 0x368   : > { %v809_v6 = vsel %vm621_vm3, %v804_v1, %v2422_v48  ;;  %v777_v8 = vsel %vm3621_vm14, %v772_v2, %v2427_v59  ;;  %v822_v10 = vpack.c.bf16 %v2756_v9, %v782_v3  ;;  %2218 = vmatprep.subr.bf16.mxu1 %v2517_v44  ;;  %v2521_v48 = vld [vmem:[%s3600_s9 + $0x60] sm:$0xff]  }
 0x369   : > { %v2075_v11 = vpack.c.bf16 %v809_v6, %v765_v5  ;;  %v781_v12 = vsel %vm3027_vm7, %v777_v8, 0.0  ;;  %2073 = vmatprep.subr.msk.bf16.mxu0 %vm3126_vm0, %v2072_v63 }
 0x36a   : > { %v821_v13 = vpack.c.bf16 %v2756_v9, %v781_v12  ;;  %v835_v15 = vand.u32 %v3191_v62, %v822_v10 }
 0x36b   : > { %2076 = vmatpush1.bf16.msk.msra.mxu0 %vm3133_vm1, %v2075_v11  ;;  %2219 = vmatpush3.bf16.msra.mxu1 %v2518_v45 }
 0x36c   : > { %v832_v7 = vand.u32 %v3191_v62, %v821_v13  ;;  %845 = vmatprep.subr.bf16.mxu0 %v835_v15  ;;  %2220 = vmatprep.subr.bf16.mxu1 %v2519_v46 }
 0x36f   : > { %846 = vmatpush1.bf16.msra.mxu0 %v832_v7  ;;  %2221 = vmatpush3.bf16.msra.mxu1 %v2520_v47 }
 0x370   : > { %2222 = vmatprep.subr.bf16.mxu1 %v2521_v48 }
 0x372   : > { %2077 = vmatmul.mubr.msk.bf16.vlgmr.msra.gmra.mrb[4].mxu0 %vm3620_vm13, %v823_v16  ;;  %vm3656_vm13 = vcmask 138240  }
 0x373   : > { %931 = vmatprep.mubr.bf16.mxu0 %v2753_v14  ;;  %vm3657_vm14 = vmmov %vm3656_vm13  ;;  %2223 = vmatpush3.bf16.msra.mxu1 %v2522_v50 }
 0x374   : > { %2224 = vmatprep.subr.bf16.mxu1 %v2523_v51 }
 0x377   : > { %2225 = vmatpush3.bf16.msra.mxu1 %v2524_v52 }
 0x378   : > { %2226 = vmatprep.subr.bf16.mxu1 %v2525_v53 }
 0x37b   : > { %2227 = vmatpush3.bf16.msra.mxu1 %v2526_v24 }
 0x445   : > { %v871_v17 = vpop.f32.mrb[4].mxu0 }
 0x446   : > { %v878_v20 = vmax.f32 %v871_v17, 0.0  ;;  %v873_v21 = vpop.f32.mrb[5].mxu0 }
 0x447   : > { %v879_v22 = vmax.f32 %v873_v21, 0.0  ;;  %v875_v23 = vpop.f32.mrb[6].mxu0 }
 0x448   : > { %v881_v25 = vpack.c.bf16 %v878_v20, %v878_v20  ;;  %946 = vrot.lane.b32.xlu0 %v878_v20, %s2744_s11  ;;  %v876_v26 = vpop.f32.mrb[7].mxu0 }
 0x449   : > { %v882_v29 = vpack.c.bf16 %v879_v22, %v879_v22  ;;  %948 = vrot.lane.b32.xlu1 %v879_v22, %s2744_s11 }
 0x44a   : > { %v894_v30 = vsel %vm626_vm12, %v881_v25, 0 }
 0x44b   : > { %2078 = vmatprep.subr.msk.bf16.mxu0 %vm626_vm12, %v882_v29  ;;  %vm889_vm12 = vcmask 64512  }
 0x44c   : > { %900 = vmatpush1.bf16.msra.mxu0 %v894_v30 }
 0x44f   : > { %2079 = vmatmul.mubr.msk.bf16.vlgmr.msra.gmra.mrb[8].mxu0 %vm889_vm12, %v880_v37 }
 0x450   : > { %1113 = vmatprep.mubr.bf16.mxu0 %v2753_v14 }
 0x4ba   : > { %v947_v32 = vpop.permute.xlu0 %946 }
 0x4bb   : > { %954 = vst.msk [vmem:[#allocation2] sm:$0xff] %vm3655_vm15, %v947_v32  ;;  %v949_v34 = vpop.permute.xlu1 %948  ;;  %vm3660_vm15 = vcmask 916480  }
 0x4bc   : > { %v3217_v35 = vsel %vm3656_vm13, %v947_v32, %v949_v34  ;;  %956 = vst.msk [vmem:[#allocation2 + $0x10] sm:$0xff] %vm3657_vm14, %v949_v34  ;;  %vm3658_vm14 = vcmask 1039360   ;;  %vm3661_vm12 = vmmov %vm3660_vm15 }
 0x4bd   : > { %955 = vst [vmem:[#allocation2 + $0x8] sm:$0xff] %v3217_v35  ;;  %vm3659_vm13 = vmmov %vm3658_vm14 }
 0x4c2   : > { %v3221_v36 = vld [vmem:[#allocation2] sm:$0xff] }
 0x4c3   : > { %965 = vrot.lane.b32.xlu0 %v3221_v36, %s2747_s28  ;;  %1025 = vrot.lane.b32.xlu1 %v3221_v36, %s2746_s20  ;;  %v961_v38 = vld [vmem:[#allocation2 + $0x10] sm:$0xff] }
 0x4c4   : > { %v2439_v39 = vpack.i.bf16 %v961_v38, %v3217_v35 }
 0x4c7   : > { %989 = vrot.lane.b32.xlu0 %v3221_v36, %s2748_s26  ;;  %977 = vrot.lane.b32.xlu1 %v3221_v36, %s2745_s17 }
 0x4cb   : > { %1001 = vrot.lane.b32.xlu0 %v3221_v36, %s2749_s24  ;;  %1035 = vrot.lane.b32.xlu1 %v3221_v36, %s2750_s25 }
 0x4cf   : > { %2440 = vrot.lane.b32.xlu1 %v2439_v39, %s2745_s17  ;;  %2430 = vrot.lane.b32.xlu0 %v2439_v39, %s2746_s20 }
 0x4d3   : > { %2450 = vrot.lane.b32.xlu1 %v2439_v39, %s2750_s25  ;;  %2435 = vrot.lane.b32.xlu0 %v2439_v39, %s2747_s28 }
 0x4d7   : > { %2460 = vrot.lane.b32.xlu1 %v2439_v39, %s2752_s14  ;;  %2445 = vrot.lane.b32.xlu0 %v2439_v39, %s2748_s26 }
 0x4db   : > { %2465 = vrot.lane.b32.xlu1 %v2439_v39, %s2751_s30  ;;  %2455 = vrot.lane.b32.xlu0 %v2439_v39, %s2749_s24 }
 0x4df   : > { %1013 = vrot.lane.b32.xlu1 %v3221_v36, %s2751_s30  ;;  %1045 = vrot.lane.b32.xlu0 %v3221_v36, %s2752_s14  ;;  %s2760_s30 = smov 118  }
 0x522   : > { %v3338_v31 = vpop.f32.mrb[8].mxu0 }
 0x523   : > { %v3340_v19 = vpop.f32.mrb[9].mxu0 }
 0x535   : > { %v966_v54 = vpop.permute.xlu0 %965  ;;  %v1026_v56 = vpop.permute.xlu1 %1025 }
 0x539   : > { %v990_v57 = vpop.permute.xlu0 %989  ;;  %v978_v58 = vpop.permute.xlu1 %977 }
 0x53d   : > { %v1002_v59 = vpop.permute.xlu0 %1001  ;;  %v1036_v4 = vpop.permute.xlu1 %1035 }
 0x541   : > { %v2431_v60 = vpop.permute.xlu0 %2430  ;;  %v2441_v61 = vpop.permute.xlu1 %2440 }
 0x542   : > { %v2433_v63 = vunpack.i.h.bf16 %v2431_v60  ;;  %v2432_v1 = vunpack.i.l.bf16 %v2431_v60  ;;  %v2443_v5 = vunpack.i.h.bf16 %v2441_v61  ;;  %v2442_v6 = vunpack.i.l.bf16 %v2441_v61  ;;  %v2512_v60 = vld [vmem:[#allocation7] sm:$0xff]   ;;  %v937_v61 = vpop.f32.mrb[10].mxu0 }
 0x544   : > { %v1031_v2 = vsel %vm3658_vm14, %v1026_v56, %v2432_v1  ;;  %v1032_v3 = vsel %vm3659_vm13, %v2432_v1, %v2433_v63  ;;  %v983_v17 = vsel %vm3660_vm15, %v978_v58, %v2442_v6  ;;  %v984_v20 = vsel %vm3661_vm12, %v2442_v6, %v2443_v5  ;;  %vm3664_vm15 = vmpackc.low %vm3023_vm5, %vm3033_vm8  ;;  %v2528_v63 = vld [vmem:[%s3600_s9 + $0x38] sm:$0xff]  }
 0x545   : > { %v2082_v8 = vpack.c.bf16 %v1032_v3, %v3217_v35  ;;  %v2085_v10 = vpack.c.bf16 %v1031_v2, %v3221_v36  ;;  %v2436_v11 = vpop.permute.xlu0 %2435  ;;  %v2451_v12 = vpop.permute.xlu1 %2450  ;;  %vm3662_vm14 = vcmask 908288   ;;  %vm3667_vm5 = vcmask 769024  }
 0x546   : > { %v2438_v13 = vunpack.i.h.bf16 %v2436_v11  ;;  %v2437_v15 = vunpack.i.l.bf16 %v2436_v11  ;;  %v2453_v7 = vunpack.i.h.bf16 %v2451_v12  ;;  %v2452_v16 = vunpack.i.l.bf16 %v2451_v12  ;;  %vm3663_vm13 = vmmov %vm3662_vm14 }
 0x547   : > { %2083 = vmatprep.subr.msk.bf16.mxu0 %vm3126_vm0, %v2082_v8  ;;  %vm3668_vm4 = vmmov %vm3667_vm5 }
 0x548   : > { %v971_v21 = vsel %vm519_vm9, %v966_v54, %v2437_v15  ;;  %v972_v22 = vsel %vm519_vm9, %v2437_v15, %v2438_v13  ;;  %2086 = vmatpush1.bf16.msk.msra.mxu0 %vm3133_vm1, %v2085_v10  ;;  %v1041_v34 = vsel %vm3662_vm14, %v1036_v4, %v2452_v16  ;;  %v1042_v35 = vsel %vm3663_vm13, %v2452_v16, %v2453_v7 }
 0x549   : > { %v2088_v23 = vpack.c.bf16 %v984_v20, %v972_v22  ;;  %v2091_v25 = vpack.c.bf16 %v983_v17, %v971_v21  ;;  %v2446_v26 = vpop.permute.xlu0 %2445  ;;  %v2461_v29 = vpop.permute.xlu1 %2460  ;;  %vm3665_vm9 = vcmask 900096   ;;  %v471_v22 = vand.u32 7, %v3015_v18  ;;  %v1455_v18 = vld [vmem:[%s3599_s8 + $0x8] sm:$0xff] }
 0x54a   : > { %v2448_v30 = vunpack.i.h.bf16 %v2446_v26  ;;  %v2447_v32 = vunpack.i.l.bf16 %v2446_v26  ;;  %vm3666_vm12 = vmmov %vm3665_vm9  ;;  %v2463_v38 = vunpack.i.h.bf16 %v2461_v29  ;;  %v2462_v39 = vunpack.i.l.bf16 %v2461_v29  ;;  %v2537_v26 = vld [vmem:[%s3601_s10 + $0x50] ss:$8 sps:$4 sm:$0xff]  }
 0x54b   : > { %2089 = vmatprep.subr.msk.bf16.mxu0 %vm3664_vm15, %v2088_v23  ;;  %vm1400_vm14 = vcmask 1040384   ;;  %vm1488_vm13 = vcmask 130048   ;;  %vm1609_vm15 = vcmask 523264  }
 0x54c   : > { %v995_v36 = vsel %vm3665_vm9, %v990_v57, %v2447_v32  ;;  %v996_v37 = vsel %vm3666_vm12, %v2447_v32, %v2448_v30  ;;  %2092 = vmatpush1.bf16.msk.msra.mxu0 %vm2062_vm10, %v2091_v25  ;;  %v1052_v47 = vsel %vm621_vm3, %v2462_v39, %v2463_v38  ;;  %vm479_vm10 = vcmp.ge.s32.totalorder %v471_v22, 1  ;;  %v1456_v30 = vld [vmem:[%s3599_s8 + $0x10] sm:$0xff]  ;;  %v883_v32 = vld [vmem:[%s3597_s6] sm:$0xff] }
 0x54d   : > { %v2094_v40 = vpack.c.bf16 %v996_v37, %v1042_v35  ;;  %v2097_v41 = vpack.c.bf16 %v995_v36, %v1041_v34  ;;  %v2456_v42 = vpop.permute.xlu0 %2455  ;;  %v2466_v28 = vpop.permute.xlu1 %2465  ;;  %v2529_v34 = vld [vmem:[%s3595_s4 + $0x4] ss:$8 sps:$4 sm:$0xff]  }
 0x54e   : > { %v2458_v43 = vunpack.i.h.bf16 %v2456_v42  ;;  %v2457_v44 = vunpack.i.l.bf16 %v2456_v42  ;;  %v2468_v45 = vunpack.i.h.bf16 %v2466_v28  ;;  %v2467_v46 = vunpack.i.l.bf16 %v2466_v28 }
 0x54f   : > { %2095 = vmatprep.subr.msk.bf16.mxu0 %vm3170_vm2, %v2094_v40  ;;  %vm3672_vm2 = vcmask 138240  }
 0x550   : > { %v1008_v48 = vsel %vm558_vm6, %v2457_v44, %v2458_v43  ;;  %v1020_v27 = vsel %vm3667_vm5, %v2467_v46, %v2468_v45  ;;  %2098 = vmatpush1.bf16.msk.msra.mxu0 %vm3179_vm11, %v2097_v41  ;;  %v1007_v54 = vsel %vm558_vm6, %v1002_v59, %v2457_v44  ;;  %vm3669_vm6 = vcmask 596992   ;;  %vm3356_vm11 = vmpackc.low %vm479_vm10, %vm479_vm10 }
 0x551   : > { %v2100_v50 = vpack.c.bf16 %v1052_v47, %v1008_v48  ;;  %v1046_v51 = vpop.permute.xlu0 %1045  ;;  %v1014_v52 = vpop.permute.xlu1 %1013  ;;  %v1024_v53 = vsel %vm3033_vm8, %v1020_v27, 0.0  ;;  %vm1305_vm8 = vcmask 597064  }
 0x552   : > { %v1051_v49 = vsel %vm621_vm3, %v1046_v51, %v2462_v39  ;;  %v1019_v56 = vsel %vm3668_vm4, %v1014_v52, %v2467_v46  ;;  %v1064_v57 = vpack.c.bf16 %v2756_v9, %v1024_v53  ;;  %vm480_vm3 = vcmp.le.s32.totalorder %v471_v22, 6  ;;  %v2536_v22 = vld [vmem:[%s3601_s10 + $0x44] ss:$8 sps:$4 sm:$0xff]  }
 0x553   : > { %v2103_v58 = vpack.c.bf16 %v1051_v49, %v1007_v54  ;;  %v1023_v4 = vsel %vm3027_vm7, %v1019_v56, 0.0  ;;  %2101 = vmatprep.subr.msk.bf16.mxu0 %vm3126_vm0, %v2100_v50  ;;  %vm430_vm0 = vcmask 72704   ;;  %vm433_vm7 = vcmask 671304  }
 0x554   : > { %v1063_v55 = vpack.c.bf16 %v2756_v9, %v1023_v4  ;;  %v1079_v33 = vand.u32 %v1064_v57, %v3191_v62  ;;  %v938_v9 = vpop.f32.mrb[11].mxu0  ;;  %431 = vst.msk [vmem:[#allocation3] sm:$0xff] %vm430_vm0, %v2743_v0  ;;  %432 = vst.msk [vmem:[#allocation3 + $0x8] sm:$0xff] %vm430_vm0, %v2743_v0 }
 0x555   : > { %2104 = vmatpush1.bf16.msk.msra.mxu0 %vm3133_vm1, %v2103_v58  ;;  %434 = vst.msk [vmem:[#allocation3] sm:$0xff] %vm433_vm7, %v2743_v0  ;;  %435 = vst.msk [vmem:[#allocation3 + $0x8] sm:$0xff] %vm433_vm7, %v2743_v0 }
 0x556   : > { %v1076_v59 = vand.u32 %v1063_v55, %v3191_v62  ;;  %1089 = vmatprep.subr.bf16.mxu0 %v1079_v33  ;;  %v2527_v62 = vld [vmem:[%s3600_s9 + $0x78] sm:$0xff]   ;;  %vm3382_vm1 = vmpackc.low %vm480_vm3, %vm480_vm3 }
 0x557   : > { %2228 = vmatprep.subr.bf16.mxu1 %v2527_v62  ;;  %v1402_v62 = vsel %vm1400_vm14, 65535, %v2753_v14 }
 0x558   : > { %2229 = vmatpush3.bf16.msra.mxu1 %v2528_v63 }
 0x559   : > { %1090 = vmatpush1.bf16.msra.mxu0 %v1076_v59 }
 0x55a   : > { %1406 = vmatprep.subr.bf16.mxu0 %v2753_v14 }
 0x55c   : > { %2105 = vmatmul.mubr.msk.bf16.vlgmr.msra.gmra.mrb[12].mxu0 %vm3669_vm6, %v2512_v60 }
 0x55d   : > { %2142 = vmatprep.mubr.msk.bf16.mxu0 %vm3672_vm2, %v2529_v34  ;;  %v2548_v34 = vld [vmem:[%s3601_s10 + $0x4] ss:$8 sps:$4 sm:$0xff]  }
 0x62f   : > { %v1115_v1 = vpop.f32.mrb[12].mxu0 }
 0x630   : > { %v1117_v2 = vpop.f32.mrb[13].mxu0 }
 0x631   : > { %v1119_v3 = vpop.f32.mrb[14].mxu0 }
 0x632   : > { %v1124_v5 = vpack.c.bf16 %v1119_v3, %v1115_v1  ;;  %v1121_v6 = vpop.f32.mrb[15].mxu0  ;;  %v2531_v3 = vld [vmem:[%s3595_s4] ss:$8 sps:$4 sm:$0xff]  }
 0x633   : > { %v1125_v8 = vpack.c.bf16 %v1121_v6, %v1117_v2  ;;  %v1404_v2 = vand.u32 1.0|1.0, %v1402_v62  ;;  %v2570_v62 = vld [vmem:[%s3601_s10 + $0xc0] ss:$8 sps:$4 sm:$0xff]  }
 0x635   : > { %1286 = vmatprep.mubr.bf16.mxu1 %v1125_v8 }
 0x636   : > { %1287 = vmatmul.mubr.bf16.vlgmr.msra.gmra.mrb[0].mxu1 %v1124_v5 }
 0x709   : > { %v2230_v10 = vpop.f32.mrb[0].mxu1 }
 0x70a   : > { %v2231_v11 = vpop.f32.mrb[1].mxu1 }
 0x70b   : > { %v2232_v12 = vadd.f32 %v2231_v11, %v2230_v10  ;;  %v2233_v13 = vpop.f32.mrb[2].mxu1 }
 0x70c   : > { %v2234_v15 = vpop.f32.mrb[3].mxu1 }
 0x70d   : > { %v1295_v7 = vmax.f32 %v2232_v12, 0.0  ;;  %v2235_v16 = vadd.f32 %v2234_v15, %v2233_v13  ;;  %v2532_v12 = vld [vmem:[%s3598_s7] sm:$0xff]  }
 0x70e   : > { %2241 = vmatprep.mubr.msk.bf16.mxu1 %vm1488_vm13, %v2532_v12 }
 0x70f   : > { %v1296_v17 = vmax.f32 %v2235_v16, 0.0  ;;  %1299 = vrot.lane.b32.xlu0 %v1295_v7, %s2757_s16 }
 0x711   : > { %1301 = vrot.lane.b32.xlu1 %v1296_v17, %s2757_s16 }
 0x781   : > { %v1300_v20 = vpop.permute.xlu0 %1299 }
 0x782   : > { %1306 = vst.msk [vmem:[#allocation3] sm:$0xff] %vm1305_vm8, %v1300_v20 }
 0x783   : > { %v1302_v21 = vpop.permute.xlu1 %1301 }
 0x784   : > { %1307 = vst.msk [vmem:[#allocation3 + $0x8] sm:$0xff] %vm1305_vm8, %v1302_v21 }
 0x789   : > { %v1308_v0 = vld [vmem:[#allocation3] sm:$0xff] }
 0x78b   : > { %v1309_v23 = vld [vmem:[#allocation3 + $0x8] sm:$0xff] }
 0x78c   : > { %v2474_v25 = vpack.i.bf16 %v1309_v23, %v1308_v0  ;;  %v2125_v29 = vpack.c.bf16 %v1309_v23, %v1308_v0  ;;  %v2533_v0 = vld [vmem:[%s3598_s7 + $0x8] sm:$0xff]  }
 0x78d   : > { %v2534_v23 = vld [vmem:[%s3601_s10 + $0x40] ss:$8 sps:$4 sm:$0xff]  }
 0x78e   : > { %2475 = vrot.lane.b32.xlu1 %v2474_v25, %s2747_s28  ;;  %2470 = vrot.lane.b32.xlu0 %v2474_v25, %s2746_s20  ;;  %s2761_s28 = smov [#allocation10]  }
 0x78f   : > { %2126 = vmatpush1.bf16.msk.msra.mxu0 %vm3356_vm11, %v2125_v29  ;;  %v2542_v29 = vld [vmem:[%s3601_s10 + $0x64] ss:$8 sps:$4 sm:$0xff]   ;;  %s2670_s14 = sshll.u32 %s2761_s28, 4  ;;  %s2671_s14 = int_to_ptr.vmem [resolvable:$false] %s2670_s14 }
 0x790   : > { %1408 = vmatprep.subr.bf16.mxu0 %v2753_v14  ;;  %s2672_s20 = scalar_lea.vmem %s2671_s14, 1024 }
 0x792   : > { %2485 = vrot.lane.b32.xlu1 %v2474_v25, %s2758_s15  ;;  %2480 = vrot.lane.b32.xlu0 %v2474_v25, %s2759_s19  ;;  %s3675_s15 = sld [smem:[#allocation20_spill]] }
 0x796   : > { %2495 = vrot.lane.b32.xlu1 %v2474_v25, %s2745_s17  ;;  %2490 = vrot.lane.b32.xlu0 %v2474_v25, %s2760_s30 }
 0x798   : > { %s3544_s19 = scalar_lea.hbm %s3675_s15, %s2213_s12 }
 0x79a   : > { %2505 = vrot.lane.b32.xlu1 %v2474_v25, %s2748_s26  ;;  %2500 = vrot.lane.b32.xlu0 %v2474_v25, %s2750_s25  ;;  %s417_s26 = sand.u32 1, %s2728_s18   ;;  %v2539_v25 = vld [vmem:[%s3601_s10 + $0x54] ss:$8 sps:$4 sm:$0xff]  }
 0x79b   : > { %s2049_s25 = sshll.u32 %s417_s26, 5  ;;  %s3550_s30 = scalar_lea.sflag [#allocation6], %s417_s26 }
 0x79c   : > { %s3414_s24 = scalar_lea.vmem [#allocation10], %s2049_s25 }
 0x79d   : > { %s1946_s25 = sshll.u32 %s3414_s24, 4  ;;  %s3539_s25 = int_to_ptr.vmem [resolvable:$true] %s1946_s25 }
 0x79e   : > { %1465 = vperm.xlu1 %2510, %v1455_v18   ;;  %v2540_v18 = vld [vmem:[%s3601_s10 + $0x60] ss:$8 sps:$4 sm:$0xff]   ;;  %s2666_s21 = scalar_lea.vmem %s3539_s25, 512  ;;  %p2673_p13 = scmp.lt.s32.totalorder %s3539_s25, %s2671_s14 }
 0x79f   : > { %p2667_p12 = scmp.ne.s32.totalorder %s3539_s25, %s2666_s21  ;;  %p2674_p1 = scmp.lt.s32.totalorder %s2672_s20, %s2666_s21 }
 0x7a1   : > { %p2668_p8 = pnand %p2667_p12, %p3676_p7  ;;  %p2675_p6 = por %p2674_p1, %p2673_p13 }
 0x7a2   : > { %1470 = vperm.xlu1 %2510, %v1456_v30   ;;  %v2545_v30 = vld [vmem:[%s3601_s10 + $0x74] ss:$8 sps:$4 sm:$0xff]  }
 0x7a3   : > { %p2669_p11 = pneg %p2668_p8 }
 0x7a5   : > { %p2676_p9 = pnand %p2675_p6, %p2669_p11 }
 0x7a6   : > { %886 = vperm.xlu1 %2510, %v883_v32   ;;  %v2543_v32 = vld [vmem:[%s3601_s10 + $0x70] ss:$8 sps:$4 sm:$0xff]  }
 0x800   : > { %v2476_v35 = vpop.permute.xlu1 %2475  ;;  %v2471_v36 = vpop.permute.xlu0 %2470 }
 0x801   : > { %v2473_v37 = vunpack.i.h.bf16 %v2471_v36  ;;  %v2472_v38 = vunpack.i.l.bf16 %v2471_v36  ;;  %v2478_v39 = vunpack.i.h.bf16 %v2476_v35  ;;  %v2477_v40 = vunpack.i.l.bf16 %v2476_v35 }
 0x803   : > { %v1377_v41 = vpack.c.bf16 %v2473_v37, %v2472_v38  ;;  %v2128_v43 = vpack.c.bf16 %v2478_v39, %v2477_v40 }
 0x804   : > { %v2481_v42 = vpop.permute.xlu0 %2480  ;;  %v2486_v46 = vpop.permute.xlu1 %2485 }
 0x805   : > { %1409 = vmatpush1.bf16.msra.mxu0 %v1377_v41  ;;  %v2483_v44 = vunpack.i.h.bf16 %v2481_v42  ;;  %v2482_v45 = vunpack.i.l.bf16 %v2481_v42  ;;  %v2488_v47 = vunpack.i.h.bf16 %v2486_v46  ;;  %v2487_v48 = vunpack.i.l.bf16 %v2486_v46 }
 0x806   : > { %1410 = vmatprep.subr.bf16.mxu0 %v2753_v14 }
 0x807   : > { %v2131_v27 = vpack.c.bf16 %v2483_v44, %v2482_v45  ;;  %v1380_v51 = vpack.c.bf16 %v2488_v47, %v2487_v48 }
 0x808   : > { %v2491_v50 = vpop.permute.xlu0 %2490  ;;  %v2496_v54 = vpop.permute.xlu1 %2495 }
 0x809   : > { %2129 = vmatpush1.bf16.msk.msra.mxu0 %vm3382_vm1, %v2128_v43  ;;  %v2493_v52 = vunpack.i.h.bf16 %v2491_v50  ;;  %v2492_v53 = vunpack.i.l.bf16 %v2491_v50  ;;  %v2498_v49 = vunpack.i.h.bf16 %v2496_v54  ;;  %v2497_v56 = vunpack.i.l.bf16 %v2496_v54  ;;  %v2546_v50 = vld [vmem:[%s3601_s10] ss:$8 sps:$4 sm:$0xff]   ;;  %v2554_v54 = vld [vmem:[%s3601_s10 + $0x24] ss:$8 sps:$4 sm:$0xff]  }
 0x80a   : > { %1412 = vmatprep.subr.bf16.mxu0 %v2753_v14 }
 0x80b   : > { %v2134_v57 = vpack.c.bf16 %v2493_v52, %v2492_v53  ;;  %v2137_v4 = vpack.c.bf16 %v2498_v49, %v2497_v56  ;;  %v2551_v52 = vld [vmem:[%s3601_s10 + $0x14] ss:$8 sps:$4 sm:$0xff]   ;;  %v2549_v53 = vld [vmem:[%s3601_s10 + $0x10] ss:$8 sps:$4 sm:$0xff]   ;;  %v2552_v49 = vld [vmem:[%s3601_s10 + $0x20] ss:$8 sps:$4 sm:$0xff]  }
 0x80c   : > { %v2501_v58 = vpop.permute.xlu0 %2500  ;;  %v2506_v59 = vpop.permute.xlu1 %2505  ;;  %v2557_v56 = vld [vmem:[%s3601_s10 + $0x34] ss:$8 sps:$4 sm:$0xff]  }
 0x80d   : > { %2132 = vmatpush1.bf16.msk.msra.mxu0 %vm3356_vm11, %v2131_v27  ;;  %v2503_v55 = vunpack.i.h.bf16 %v2501_v58  ;;  %v2502_v33 = vunpack.i.l.bf16 %v2501_v58  ;;  %v2508_v60 = vunpack.i.h.bf16 %v2506_v59  ;;  %v2507_v61 = vunpack.i.l.bf16 %v2506_v59  ;;  %v2560_v58 = vld [vmem:[%s3601_s10 + $0x84] ss:$8 sps:$4 sm:$0xff]  }
 0x80e   : > { %1414 = vmatprep.subr.bf16.mxu0 %v2753_v14  ;;  %v2566_v59 = vld [vmem:[%s3601_s10 + $0xa4] ss:$8 sps:$4 sm:$0xff]  }
 0x80f   : > { %v1383_v9 = vpack.c.bf16 %v2503_v55, %v2502_v33  ;;  %v2140_v63 = vpack.c.bf16 %v2508_v60, %v2507_v61  ;;  %v2563_v55 = vld [vmem:[%s3601_s10 + $0x94] ss:$8 sps:$4 sm:$0xff]   ;;  %v2561_v33 = vld [vmem:[%s3601_s10 + $0x90] ss:$8 sps:$4 sm:$0xff]   ;;  %v2564_v60 = vld [vmem:[%s3601_s10 + $0xa0] ss:$8 sps:$4 sm:$0xff]  }
 0x810   : > { %v2569_v61 = vld [vmem:[%s3601_s10 + $0xb4] ss:$8 sps:$4 sm:$0xff]  }
 0x811   : > { %1415 = vmatpush1.bf16.msra.mxu0 %v1380_v51 }
 0x812   : > { %1416 = vmatprep.subr.bf16.mxu0 %v2753_v14 }
 0x815   : > { %2135 = vmatpush1.bf16.msk.msra.mxu0 %vm3382_vm1, %v2134_v57  ;;  %v2555_v57 = vld [vmem:[%s3601_s10 + $0x30] ss:$8 sps:$4 sm:$0xff]  }
 0x816   : > { %1418 = vmatprep.subr.bf16.mxu0 %v2753_v14 }
 0x819   : > { %2138 = vmatpush1.bf16.msk.msra.mxu0 %vm3356_vm11, %v2137_v4  ;;  %v2558_v4 = vld [vmem:[%s3601_s10 + $0x80] ss:$8 sps:$4 sm:$0xff]  }
 0x81a   : > { %1420 = vmatprep.subr.bf16.mxu0 %v2753_v14 }
 0x81d   : > { %v3399_v24 = vpop.permute.xlu1 %1465  ;;  %1421 = vmatpush1.bf16.msra.mxu0 %v1383_v9  ;;  %v2567_v9 = vld [vmem:[%s3601_s10 + $0xb0] ss:$8 sps:$4 sm:$0xff]  }
 0x81e   : > { %1422 = vmatprep.subr.bf16.mxu0 %v2753_v14 }
 0x821   : > { %v1471_v1 = vpop.permute.xlu1 %1470  ;;  %2141 = vmatpush1.bf16.msk.msra.mxu0 %vm3382_vm1, %v2140_v63  ;;  %v2575_v63 = vld [vmem:[%s3601_s10 + $0xd4] ss:$8 sps:$4 sm:$0xff]  }
 0x822   : > { %1424 = vmatprep.subr.bf16.mxu0 %v2753_v14 }
 0x825   : > { %v887_v5 = vpop.permute.xlu1 %886  ;;  %1425 = vmatpush1.bf16.msra.mxu0 %v1404_v2  ;;  %v2578_v2 = vld [vmem:[%s3601_s10 + $0xe4] ss:$8 sps:$4 sm:$0xff]  }
 0x826   : > { %v934_v6 = vadd.f32 %v3338_v31, %v887_v5  ;;  %v936_v8 = vadd.f32 %v3340_v19, %v887_v5  ;;  %v1454_v31 = vld [vmem:[%s3599_s8] sm:$0xff]  ;;  %v1457_v19 = vld [vmem:[%s3599_s8 + $0x18] sm:$0xff] }
 0x827   : > { %1460 = vperm.xlu0 %2509, %v1454_v31   ;;  %v2581_v5 = vld [vmem:[%s3601_s10 + $0xf4] ss:$8 sps:$4 sm:$0xff]  }
 0x828   : > { %v940_v10 = vmax.f32 %v934_v6, 0.0  ;;  %v941_v11 = vmax.f32 %v936_v8, 0.0  ;;  %1439 = vmatmul.mubr.bf16.vlgmr.msra.gmra.mrb[16].mxu0 %v2531_v3  ;;  %v2576_v3 = vld [vmem:[%s3601_s10 + $0xe0] ss:$8 sps:$4 sm:$0xff]  }
 0x82a   : > { %942 = vst [vmem:[%s3414_s24] sm:$0xff] %v940_v10  ;;  %943 = vst [vmem:[%s3414_s24 + $0x8] sm:$0xff] %v941_v11 }
 0x82b   : > { %1475 = vperm.xlu0 %2509, %v1457_v19  }
 0x8a6   : > { %v1461_v35 = vpop.permute.xlu0 %1460 }
 0x8aa   : > { %v1476_v37 = vpop.permute.xlu0 %1475 }
 0x8fb   : > { %v1440_v13 = vpop.f32.mrb[16].mxu0 }
 0x8fc   : > { %v1442_v15 = vpop.f32.mrb[17].mxu0  ;;  %v1447_v16 = vmax.f32 %v1440_v13, 0.0 }
 0x8fd   : > { %v1443_v7 = vpop.f32.mrb[18].mxu0 }
 0x8fe   : > { %v1448_v17 = vmax.f32 %v1443_v7, 0.0  ;;  %v1445_v20 = vpop.f32.mrb[19].mxu0 }
 0x900   : > { %v1453_v21 = vpack.c.bf16 %v1448_v17, %v1447_v16 }
 0x902   : > { %2239 = vmatprep.subr.bf16.mxu1 %v1453_v21 }
 0x903   : > { %2240 = vmatpush3.bf16.msra.mxu1 %v1453_v21 }
 0x904   : > { %1613 = vmatprep.subr.bf16.mxu1 %v2536_v22 }
 0x906   : > { %2242 = vmatmul.mubr.msk.bf16.vlgmr.msra.gmra.mrb[4].mxu1 %vm1488_vm13, %v2533_v0 }
 0x907   : > { %1614 = vmatpush1.bf16.msra.mxu1 %v2534_v23  ;;  %1645 = vmatprep.mubr.bf16.mxu1 %v2753_v14 }
 0x908   : > { %1615 = vmatprep.subr.bf16.mxu1 %v2539_v25 }
 0x90b   : > { %1616 = vmatpush1.bf16.msra.mxu1 %v2537_v26 }
 0x90c   : > { %1617 = vmatprep.subr.bf16.mxu1 %v2542_v29 }
 0x90f   : > { %1618 = vmatpush1.bf16.msra.mxu1 %v2540_v18 }
 0x910   : > { %1619 = vmatprep.subr.bf16.mxu1 %v2545_v30 }
 0x913   : > { %1620 = vmatpush1.bf16.msra.mxu1 %v2543_v32 }
 0x914   : > { %1697 = vmatprep.subr.bf16.mxu1 %v2548_v34 }
 0x9d9   : > { %v2243_v36 = vpop.f32.mrb[4].mxu1 }
 0x9da   : > { %v1538_v38 = vadd.f32 %v2243_v36, %v1471_v1  ;;  %v1529_v39 = vpop.f32.mrb[5].mxu1  ;;  %v2573_v1 = vld [vmem:[%s3601_s10 + $0xd0] ss:$8 sps:$4 sm:$0xff]  }
 0x9db   : > { %v1530_v40 = vadd.f32 %v1529_v39, %v1461_v35  ;;  %v2244_v41 = vpop.f32.mrb[6].mxu1 }
 0x9dc   : > { %v1532_v42 = vpop.f32.mrb[7].mxu1  ;;  %v1541_v28 = vadd.f32 %v2244_v41, %v1476_v37  ;;  %v1546_v44 = vmax.f32 %v1538_v38, 0.0 }
 0x9dd   : > { %v1533_v43 = vadd.f32 %v1532_v42, %v3399_v24  ;;  %v1544_v46 = vmax.f32 %v1530_v40, 0.0  ;;  %v2572_v24 = vld [vmem:[%s3601_s10 + $0xc4] ss:$8 sps:$4 sm:$0xff]  }
 0x9de   : > { %v1547_v45 = vmax.f32 %v1541_v28, 0.0 }
 0x9df   : > { %v1545_v47 = vmax.f32 %v1533_v43, 0.0 }
 0x9e0   : > { %v1549_v48 = vpack.c.bf16 %v1547_v45, %v1546_v44 }
 0x9e1   : > { %v1548_v27 = vpack.c.bf16 %v1545_v47, %v1544_v46 }
 0x9e2   : > { %v1843_v6 = vrot.slane %v1549_v48, 4 }
 0x9e3   : > { %v1568_v51 = vrot.slane %v1548_v27, 4 }
 0x9e5   : > { %2163 = vmatmul.mubr.msk.bf16.vlgmr.msra.gmra.mrb[8].mxu1 %vm1609_vm15, %v1568_v51 }
 0x9e6   : > { %1698 = vmatpush1.bf16.msra.mxu1 %v2546_v50  ;;  %1729 = vmatprep.mubr.bf16.mxu1 %v2753_v14 }
 0x9e7   : > { %1699 = vmatprep.subr.bf16.mxu1 %v2551_v52 }
 0x9ea   : > { %1700 = vmatpush1.bf16.msra.mxu1 %v2549_v53 }
 0x9eb   : > { %1701 = vmatprep.subr.bf16.mxu1 %v2554_v54 }
 0x9ee   : > { %1702 = vmatpush1.bf16.msra.mxu1 %v2552_v49 }
 0x9ef   : > { %1703 = vmatprep.subr.bf16.mxu1 %v2557_v56 }
 0x9f2   : > { %1704 = vmatpush1.bf16.msra.mxu1 %v2555_v57 }
 0x9f3   : > { %1790 = vmatprep.subr.bf16.mxu1 %v2560_v58 }
 0x9f5   : > { %2172 = vmatmul.mubr.msk.bf16.vlgmr.msra.gmra.mrb[8].mxu1 %vm1609_vm15, %v1548_v27 }
 0x9f6   : > { %1791 = vmatpush1.bf16.msra.mxu1 %v2558_v4  ;;  %1822 = vmatprep.mubr.bf16.mxu1 %v2753_v14 }
 0x9f7   : > { %1792 = vmatprep.subr.bf16.mxu1 %v2563_v55 }
 0x9fa   : > { %1793 = vmatpush1.bf16.msra.mxu1 %v2561_v33 }
 0x9fb   : > { %1794 = vmatprep.subr.bf16.mxu1 %v2566_v59 }
 0x9fe   : > { %1795 = vmatpush1.bf16.msra.mxu1 %v2564_v60 }
 0x9ff   : > { %1796 = vmatprep.subr.bf16.mxu1 %v2569_v61 }
 0xa02   : > { %1797 = vmatpush1.bf16.msra.mxu1 %v2567_v9 }
 0xa03   : > { %1887 = vmatprep.subr.bf16.mxu1 %v2572_v24 }
 0xa05   : > { %2189 = vmatmul.mubr.msk.bf16.vlgmr.msra.gmra.mrb[8].mxu1 %vm1609_vm15, %v1549_v48 }
 0xa06   : > { %1888 = vmatpush1.bf16.msra.mxu1 %v2570_v62  ;;  %1919 = vmatprep.mubr.bf16.mxu1 %v2753_v14  ;;  %v2579_v14 = vld [vmem:[%s3601_s10 + $0xf0] ss:$8 sps:$4 sm:$0xff]  }
 0xa07   : > { %1889 = vmatprep.subr.bf16.mxu1 %v2575_v63 }
 0xa0a   : > { %1890 = vmatpush1.bf16.msra.mxu1 %v2573_v1 }
 0xa0b   : > { %1891 = vmatprep.subr.bf16.mxu1 %v2578_v2 }
 0xa0e   : > { %1892 = vmatpush1.bf16.msra.mxu1 %v2576_v3 }
 0xa0f   : > { %1893 = vmatprep.subr.bf16.mxu1 %v2581_v5 }
 0xa12   : > { %1894 = vmatpush1.bf16.msra.mxu1 %v2579_v14 }
 0xa15   : > { %2206 = vmatmul.mubr.msk.bf16.vlgmr.msra.gmra.mrb[8].mxu1 %vm1609_vm15, %v1843_v6 }
 0xae8   : > { %v1921_v8 = vpop.f32.mrb[8].mxu1 }
 0xae9   : > { %1930 = vst [vmem:[%s3414_s24 + $0x10] sm:$0xff] %v1921_v8  ;;  %v1923_v10 = vpop.f32.mrb[9].mxu1 }
 0xaea   : > { %1931 = vst [vmem:[%s3414_s24 + $0x18] sm:$0xff] %v1923_v10  ;;  %v1925_v11 = vpop.f32.mrb[10].mxu1 }
 0xaeb   : > { %v1926_v12 = vpop.f32.mrb[11].mxu1 }
 0xaec   : > { %2679 = shalt.err (!%p2676_p9)
}
 0xaed   : > { %s2680_s26 = scalar_lea.hbm %s3544_s19, 512  ;;  %s2684_s29 = scalar_lea.hbm %s3675_s15, 1024 }
 0xaee   : > { %p2681_p2 = scmp.ne.s32.totalorder %s3544_s19, %s2680_s26  ;;  %p2685_p4 = scmp.lt.u32.totalorder %s3544_s19, %s3675_s15 }
 0xaef   : > { %p2686_p5 = scmp.lt.u32.totalorder %s2684_s29, %s2680_s26  ;;  %p2688_p12 = scmp.lt.u32.totalorder %s2680_s26, %s3544_s19 }
 0xaf0   : > { %p2682_p3 = pnand %p2681_p2, %p3676_p7 }
 0xaf1   : > { %p2687_p10 = por %p2686_p5, %p2685_p4 }
 0xaf2   : > { %p2683_p0 = pneg %p2682_p3 }
 0xaf3   : > { %p2689_p8 = por %p2688_p12, %p2687_p10 }
 0xaf5   : > { %p2690_p11 = pnand %p2689_p8, %p2683_p0 }
 0xaf7   : > { %2693 = shalt.err (!%p2690_p11)
}
 0xaf8   : > { %s2762_s22 = smov 256   ;;  %s2763_s12 = smov 16  }
 0xaf9   : > { %2269 = dma.vmem_to_hbm [thread:$0]  (%p3676_p7), %s3539_s25, 512, %s3544_s19, %s3550_s30, %s2762_s22, %s2762_s22, %s2763_s12  }
 0xafa PF: > { %s3677_s11 = sld [smem:[#allocation16_spill]]  ;;  %s3678_s16 = sld [smem:[#allocation14_spill]] }
 0xafb   : > { %s3679_s21 = sld [smem:[#allocation19_spill]] }
 0xb00   : > { %p2291_p13 = scmp.ge.s32.totalorder %s3677_s11, 2  ;;  %s1961_s28 = sand.u32 1, %s3678_s16  }
 0xb01   : > { %p3680_p1 = scmp.ne.s32.totalorder %s3679_s21, 0  ;;  %s1962_s14 = scalar_lea.sflag [#allocation6], %s1961_s28 }
 0xb03   : > { %p2282_p6 = pnand %p2291_p13, %p3680_p1 }
 0xb05   : > { %2719 = dma.done.wait (!%p2282_p6), %s1962_s14, 512  }
 0xb06   : > { %2721 = vsyncadd (!%p2282_p6), %s1962_s14, 4294966784  ;;  %s3681_s20 = sld [smem:[#allocation17_spill]]  ;;  %s3682_s26 = sld [smem:[#allocation15_spill]] }
 0xb07   : > { %s3683_s19 = sld [smem:[#allocation18_spill]]  ;;  %s3684_s17 = smov %s2728_s18 }
 0xb0c   : > { %p23_p9 = scmp.ge.s32.totalorder %s3681_s20, 4   ;;  %s3685_s18 = smov %s3682_s26 }
 0xb0e   :  { %25 = sbr.rel (!%p23_p9) target bundleno = 7 (0x7), region = 115 }
 0xb15   :  { %1967 = vsyncpa [#allocation5], 1 }
 0xb16   :  { %1969 = vsyncpa [#allocation5 + $0x1], 1 }
 0xb17   :  { %1970 = vsyncpa [#allocation8], 1 }
 0xb18   :  { %1971 = vsyncpa [#allocation6], 1 }
 0xb19   :  { %1973 = vsyncpa [#allocation6 + $0x1], 1 }

</bundles_post_ra>
